<compile_context>
chip_gen: v6e
topology: v6e:2x2x1
jax: 0.10.0
libtpu: 0.0.40
codegen_flags: <defaults>
</compile_context>

<pallas_src>
import jax
import jax.numpy as jnp
from jax.experimental import pallas as pl
from jax.experimental.pallas import tpu as pltpu

C1 = 0.01 ** 2
C2 = 0.03 ** 2


def _ssim_kernel(x_ref, y_ref, out_ref):
    # x_ref / y_ref / out_ref: (B, H, W) blocks of unpadded channels.
    B, H, W = out_ref.shape

    x = x_ref[...].astype(jnp.float32)
    y = y_ref[...].astype(jnp.float32)

    def pool3x3_reflect(q):
        """Separable 3x3 box sum with a 1-pixel reflect border, built in VMEM."""
        # Vertical: reflect pad one row each side, then 3-tap sum along H.
        qv = jnp.concatenate([q[:, 1:2, :], q, q[:, H - 2:H - 1, :]], axis=1)
        v = qv[:, 0:H, :] + qv[:, 1:H + 1, :] + qv[:, 2:H + 2, :]
        # Horizontal: reflect pad one column each side, then 3-tap sum along W.
        vh = jnp.concatenate([v[:, :, 1:2], v, v[:, :, W - 2:W - 1]], axis=2)
        return vh[:, :, 0:W] + vh[:, :, 1:W + 1] + vh[:, :, 2:W + 2]

    # Hoisted products (reflect padding commutes with elementwise products,
    # so pooling the unpadded products with a reflected border is exact).
    xx = x * x
    yy = y * y
    xy = x * y

    inv9 = jnp.float32(1.0 / 9.0)
    mu_x = pool3x3_reflect(x) * inv9
    mu_y = pool3x3_reflect(y) * inv9
    sigma_x = pool3x3_reflect(xx) * inv9 - mu_x * mu_x
    sigma_y = pool3x3_reflect(yy) * inv9 - mu_y * mu_y
    sigma_xy = pool3x3_reflect(xy) * inv9 - mu_x * mu_y

    ssim_n = (2.0 * mu_x * mu_y + C1) * (2.0 * sigma_xy + C2)
    ssim_d = (mu_x * mu_x + mu_y * mu_y + C1) * (sigma_x + sigma_y + C2)

    # EUP approximate reciprocal instead of an f32 divide (frees VALU slots).
    out = jnp.clip((1.0 - ssim_n * pl.reciprocal(ssim_d, approx=True)) * 0.5,
                   0.0, 1.0)
    out_ref[...] = out.astype(out_ref.dtype)


def _pick_block_channels(nc, h, w, max_channels=8):
    """Channels per block: amortise grid-step overhead, stay inside VMEM,
    and (when possible) keep >= 2 grid steps so v7x megacore can shard."""
    per_ch_bytes = h * w * 4  # one f32 plane
    # 2 inputs + 1 output, double-buffered (~6 planes) must sit well inside
    # the default scoped-VMEM limit; budget ~8 MiB for the block pipeline.
    vmem_cap = max(1, (8 * 1024 * 1024) // (6 * per_ch_bytes))
    cap = max(1, min(max_channels, vmem_cap, nc))
    divisors = [b for b in range(1, cap + 1) if nc % b == 0]
    multi_step = [b for b in divisors if nc // b >= 2]
    return max(multi_step) if multi_step else max(divisors)


def ssim(x, y):
    """SSIM loss between two NCHW images. Returns an (N, C, H, W) array."""
    assert x.shape == y.shape and x.ndim == 4
    N, C, H, W = x.shape
    assert H >= 2 and W >= 2, "ReflectionPad2d(1) needs H, W >= 2"

    nc = N * C
    x2 = x.reshape(nc, H, W)
    y2 = y.reshape(nc, H, W)

    B = _pick_block_channels(nc, H, W)
    grid = (nc // B,)

    out = pl.pallas_call(
        _ssim_kernel,
        out_shape=jax.ShapeDtypeStruct((nc, H, W), x.dtype),
        grid_spec=pltpu.PrefetchScalarGridSpec(
            num_scalar_prefetch=0,
            grid=grid,
            in_specs=[
                pl.BlockSpec((B, H, W), lambda i: (i, 0, 0)),
                pl.BlockSpec((B, H, W), lambda i: (i, 0, 0)),
            ],
            out_specs=pl.BlockSpec((B, H, W), lambda i: (i, 0, 0)),
        ),
        compiler_params=pltpu.CompilerParams(
            dimension_semantics=("parallel",),
        ),
    )(x2, y2)
    return out.reshape(N, C, H, W)


if __name__ == "__main__":
    key = jax.random.PRNGKey(0)
    kx, ky = jax.random.split(key)
    # Small shapes consistent with the module's forward: NCHW images.
    N, C, H, W = 2, 4, 16, 16
    x = jax.random.uniform(kx, (N, C, H, W), dtype=jnp.float32)
    y = jax.random.uniform(ky, (N, C, H, W), dtype=jnp.float32)

    out = ssim(x, y)
    jax.block_until_ready(out)

    # Pure-JAX reference of the same math (exact divide).
    def ref_ssim(x, y):
        xp = jnp.pad(x, ((0, 0), (0, 0), (1, 1), (1, 1)), mode="reflect")
        yp = jnp.pad(y, ((0, 0), (0, 0), (1, 1), (1, 1)), mode="reflect")

        def pool(a):
            s = jnp.zeros_like(x)
            for di in range(3):
                for dj in range(3):
                    s = s + a[:, :, di:di + H, dj:dj + W]
            return s / 9.0

        mu_x = pool(xp)
        mu_y = pool(yp)
        sigma_x = pool(xp * xp) - mu_x ** 2
        sigma_y = pool(yp * yp) - mu_y ** 2
        sigma_xy = pool(xp * yp) - mu_x * mu_y
        n = (2 * mu_x * mu_y + C1) * (2 * sigma_xy + C2)
        d = (mu_x ** 2 + mu_y ** 2 + C1) * (sigma_x + sigma_y + C2)
        return jnp.clip((1 - n / d) / 2, 0.0, 1.0)

    ref = ref_ssim(x, y)
    assert out.shape == (N, C, H, W)
    # Tolerance accounts for the approximate (EUP) reciprocal vs exact divide.
    assert jnp.allclose(out, ref, atol=5e-3, rtol=0.0), float(
        jnp.max(jnp.abs(out - ref)))
    print("KERNEL_OK")
</pallas_src>

<mosaic_0001>
module attributes {stable_mosaic.version = 11 : i64} {
  func.func @_ssim_kernel(%arg0: i32, %arg1: memref<4x16x16xf32, #tpu.memory_space<vmem>>, %arg2: memref<4x16x16xf32, #tpu.memory_space<vmem>>, %arg3: memref<4x16x16xf32, #tpu.memory_space<vmem>>) attributes {dimension_semantics = [#tpu.dimension_semantics<parallel>], iteration_bounds = array<i64: 2>, scalar_prefetch = 0 : i64, scratch_operands = 0 : i64, tpu.core_type = #tpu.core_type<tc>, window_params = [{transform_indices = @transform_0, window_bounds = array<i64: 4, 16, 16>}, {transform_indices = @transform_1, window_bounds = array<i64: 4, 16, 16>}, {transform_indices = @transform_2, window_bounds = array<i64: 4, 16, 16>}]} {
    %c0 = arith.constant 0 : index
    %c0_0 = arith.constant 0 : index
    %c0_1 = arith.constant 0 : index
    %0 = vector.load %arg1[%c0, %c0_0, %c0_1] : memref<4x16x16xf32, #tpu.memory_space<vmem>>, vector<4x16x16xf32>
    %c0_2 = arith.constant 0 : index
    %c0_3 = arith.constant 0 : index
    %c0_4 = arith.constant 0 : index
    %1 = vector.load %arg2[%c0_2, %c0_3, %c0_4] : memref<4x16x16xf32, #tpu.memory_space<vmem>>, vector<4x16x16xf32>
    %2 = arith.mulf %0, %0 : vector<4x16x16xf32>
    %3 = arith.mulf %1, %1 : vector<4x16x16xf32>
    %4 = arith.mulf %0, %1 : vector<4x16x16xf32>
    %5 = vector.extract_strided_slice %0 {offsets = [0, 1, 0], sizes = [4, 1, 16], strides = [1, 1, 1]} : vector<4x16x16xf32> to vector<4x1x16xf32>
    %6 = vector.extract_strided_slice %0 {offsets = [0, 14, 0], sizes = [4, 1, 16], strides = [1, 1, 1]} : vector<4x16x16xf32> to vector<4x1x16xf32>
    %7 = tpu.concatenate %5, %0, %6 in 1 : vector<4x1x16xf32>, vector<4x16x16xf32>, vector<4x1x16xf32> -> vector<4x18x16xf32>
    %8 = vector.extract_strided_slice %7 {offsets = [0, 0, 0], sizes = [4, 16, 16], strides = [1, 1, 1]} : vector<4x18x16xf32> to vector<4x16x16xf32>
    %9 = vector.extract_strided_slice %7 {offsets = [0, 1, 0], sizes = [4, 16, 16], strides = [1, 1, 1]} : vector<4x18x16xf32> to vector<4x16x16xf32>
    %10 = arith.addf %8, %9 : vector<4x16x16xf32>
    %11 = vector.extract_strided_slice %7 {offsets = [0, 2, 0], sizes = [4, 16, 16], strides = [1, 1, 1]} : vector<4x18x16xf32> to vector<4x16x16xf32>
    %12 = arith.addf %10, %11 : vector<4x16x16xf32>
    %13 = vector.extract_strided_slice %12 {offsets = [0, 0, 1], sizes = [4, 16, 1], strides = [1, 1, 1]} : vector<4x16x16xf32> to vector<4x16x1xf32>
    %14 = vector.extract_strided_slice %12 {offsets = [0, 0, 14], sizes = [4, 16, 1], strides = [1, 1, 1]} : vector<4x16x16xf32> to vector<4x16x1xf32>
    %15 = tpu.concatenate %13, %12, %14 in 2 : vector<4x16x1xf32>, vector<4x16x16xf32>, vector<4x16x1xf32> -> vector<4x16x18xf32>
    %16 = vector.extract_strided_slice %15 {offsets = [0, 0, 0], sizes = [4, 16, 16], strides = [1, 1, 1]} : vector<4x16x18xf32> to vector<4x16x16xf32>
    %17 = vector.extract_strided_slice %15 {offsets = [0, 0, 1], sizes = [4, 16, 16], strides = [1, 1, 1]} : vector<4x16x18xf32> to vector<4x16x16xf32>
    %18 = arith.addf %16, %17 : vector<4x16x16xf32>
    %19 = vector.extract_strided_slice %15 {offsets = [0, 0, 2], sizes = [4, 16, 16], strides = [1, 1, 1]} : vector<4x16x18xf32> to vector<4x16x16xf32>
    %20 = arith.addf %18, %19 : vector<4x16x16xf32>
    %cst = arith.constant 0.111111112 : f32
    %21 = vector.broadcast %cst : f32 to vector<4x16x16xf32>
    %22 = arith.mulf %20, %21 : vector<4x16x16xf32>
    %23 = vector.extract_strided_slice %1 {offsets = [0, 1, 0], sizes = [4, 1, 16], strides = [1, 1, 1]} : vector<4x16x16xf32> to vector<4x1x16xf32>
    %24 = vector.extract_strided_slice %1 {offsets = [0, 14, 0], sizes = [4, 1, 16], strides = [1, 1, 1]} : vector<4x16x16xf32> to vector<4x1x16xf32>
    %25 = tpu.concatenate %23, %1, %24 in 1 : vector<4x1x16xf32>, vector<4x16x16xf32>, vector<4x1x16xf32> -> vector<4x18x16xf32>
    %26 = vector.extract_strided_slice %25 {offsets = [0, 0, 0], sizes = [4, 16, 16], strides = [1, 1, 1]} : vector<4x18x16xf32> to vector<4x16x16xf32>
    %27 = vector.extract_strided_slice %25 {offsets = [0, 1, 0], sizes = [4, 16, 16], strides = [1, 1, 1]} : vector<4x18x16xf32> to vector<4x16x16xf32>
    %28 = arith.addf %26, %27 : vector<4x16x16xf32>
    %29 = vector.extract_strided_slice %25 {offsets = [0, 2, 0], sizes = [4, 16, 16], strides = [1, 1, 1]} : vector<4x18x16xf32> to vector<4x16x16xf32>
    %30 = arith.addf %28, %29 : vector<4x16x16xf32>
    %31 = vector.extract_strided_slice %30 {offsets = [0, 0, 1], sizes = [4, 16, 1], strides = [1, 1, 1]} : vector<4x16x16xf32> to vector<4x16x1xf32>
    %32 = vector.extract_strided_slice %30 {offsets = [0, 0, 14], sizes = [4, 16, 1], strides = [1, 1, 1]} : vector<4x16x16xf32> to vector<4x16x1xf32>
    %33 = tpu.concatenate %31, %30, %32 in 2 : vector<4x16x1xf32>, vector<4x16x16xf32>, vector<4x16x1xf32> -> vector<4x16x18xf32>
    %34 = vector.extract_strided_slice %33 {offsets = [0, 0, 0], sizes = [4, 16, 16], strides = [1, 1, 1]} : vector<4x16x18xf32> to vector<4x16x16xf32>
    %35 = vector.extract_strided_slice %33 {offsets = [0, 0, 1], sizes = [4, 16, 16], strides = [1, 1, 1]} : vector<4x16x18xf32> to vector<4x16x16xf32>
    %36 = arith.addf %34, %35 : vector<4x16x16xf32>
    %37 = vector.extract_strided_slice %33 {offsets = [0, 0, 2], sizes = [4, 16, 16], strides = [1, 1, 1]} : vector<4x16x18xf32> to vector<4x16x16xf32>
    %38 = arith.addf %36, %37 : vector<4x16x16xf32>
    %cst_5 = arith.constant 0.111111112 : f32
    %39 = vector.broadcast %cst_5 : f32 to vector<4x16x16xf32>
    %40 = arith.mulf %38, %39 : vector<4x16x16xf32>
    %41 = vector.extract_strided_slice %2 {offsets = [0, 1, 0], sizes = [4, 1, 16], strides = [1, 1, 1]} : vector<4x16x16xf32> to vector<4x1x16xf32>
    %42 = vector.extract_strided_slice %2 {offsets = [0, 14, 0], sizes = [4, 1, 16], strides = [1, 1, 1]} : vector<4x16x16xf32> to vector<4x1x16xf32>
    %43 = tpu.concatenate %41, %2, %42 in 1 : vector<4x1x16xf32>, vector<4x16x16xf32>, vector<4x1x16xf32> -> vector<4x18x16xf32>
    %44 = vector.extract_strided_slice %43 {offsets = [0, 0, 0], sizes = [4, 16, 16], strides = [1, 1, 1]} : vector<4x18x16xf32> to vector<4x16x16xf32>
    %45 = vector.extract_strided_slice %43 {offsets = [0, 1, 0], sizes = [4, 16, 16], strides = [1, 1, 1]} : vector<4x18x16xf32> to vector<4x16x16xf32>
    %46 = arith.addf %44, %45 : vector<4x16x16xf32>
    %47 = vector.extract_strided_slice %43 {offsets = [0, 2, 0], sizes = [4, 16, 16], strides = [1, 1, 1]} : vector<4x18x16xf32> to vector<4x16x16xf32>
    %48 = arith.addf %46, %47 : vector<4x16x16xf32>
    %49 = vector.extract_strided_slice %48 {offsets = [0, 0, 1], sizes = [4, 16, 1], strides = [1, 1, 1]} : vector<4x16x16xf32> to vector<4x16x1xf32>
    %50 = vector.extract_strided_slice %48 {offsets = [0, 0, 14], sizes = [4, 16, 1], strides = [1, 1, 1]} : vector<4x16x16xf32> to vector<4x16x1xf32>
    %51 = tpu.concatenate %49, %48, %50 in 2 : vector<4x16x1xf32>, vector<4x16x16xf32>, vector<4x16x1xf32> -> vector<4x16x18xf32>
    %52 = vector.extract_strided_slice %51 {offsets = [0, 0, 0], sizes = [4, 16, 16], strides = [1, 1, 1]} : vector<4x16x18xf32> to vector<4x16x16xf32>
    %53 = vector.extract_strided_slice %51 {offsets = [0, 0, 1], sizes = [4, 16, 16], strides = [1, 1, 1]} : vector<4x16x18xf32> to vector<4x16x16xf32>
    %54 = arith.addf %52, %53 : vector<4x16x16xf32>
    %55 = vector.extract_strided_slice %51 {offsets = [0, 0, 2], sizes = [4, 16, 16], strides = [1, 1, 1]} : vector<4x16x18xf32> to vector<4x16x16xf32>
    %56 = arith.addf %54, %55 : vector<4x16x16xf32>
    %cst_6 = arith.constant 0.111111112 : f32
    %57 = vector.broadcast %cst_6 : f32 to vector<4x16x16xf32>
    %58 = arith.mulf %56, %57 : vector<4x16x16xf32>
    %59 = arith.mulf %22, %22 : vector<4x16x16xf32>
    %60 = arith.subf %58, %59 : vector<4x16x16xf32>
    %61 = vector.extract_strided_slice %3 {offsets = [0, 1, 0], sizes = [4, 1, 16], strides = [1, 1, 1]} : vector<4x16x16xf32> to vector<4x1x16xf32>
    %62 = vector.extract_strided_slice %3 {offsets = [0, 14, 0], sizes = [4, 1, 16], strides = [1, 1, 1]} : vector<4x16x16xf32> to vector<4x1x16xf32>
    %63 = tpu.concatenate %61, %3, %62 in 1 : vector<4x1x16xf32>, vector<4x16x16xf32>, vector<4x1x16xf32> -> vector<4x18x16xf32>
    %64 = vector.extract_strided_slice %63 {offsets = [0, 0, 0], sizes = [4, 16, 16], strides = [1, 1, 1]} : vector<4x18x16xf32> to vector<4x16x16xf32>
    %65 = vector.extract_strided_slice %63 {offsets = [0, 1, 0], sizes = [4, 16, 16], strides = [1, 1, 1]} : vector<4x18x16xf32> to vector<4x16x16xf32>
    %66 = arith.addf %64, %65 : vector<4x16x16xf32>
    %67 = vector.extract_strided_slice %63 {offsets = [0, 2, 0], sizes = [4, 16, 16], strides = [1, 1, 1]} : vector<4x18x16xf32> to vector<4x16x16xf32>
    %68 = arith.addf %66, %67 : vector<4x16x16xf32>
    %69 = vector.extract_strided_slice %68 {offsets = [0, 0, 1], sizes = [4, 16, 1], strides = [1, 1, 1]} : vector<4x16x16xf32> to vector<4x16x1xf32>
    %70 = vector.extract_strided_slice %68 {offsets = [0, 0, 14], sizes = [4, 16, 1], strides = [1, 1, 1]} : vector<4x16x16xf32> to vector<4x16x1xf32>
    %71 = tpu.concatenate %69, %68, %70 in 2 : vector<4x16x1xf32>, vector<4x16x16xf32>, vector<4x16x1xf32> -> vector<4x16x18xf32>
    %72 = vector.extract_strided_slice %71 {offsets = [0, 0, 0], sizes = [4, 16, 16], strides = [1, 1, 1]} : vector<4x16x18xf32> to vector<4x16x16xf32>
    %73 = vector.extract_strided_slice %71 {offsets = [0, 0, 1], sizes = [4, 16, 16], strides = [1, 1, 1]} : vector<4x16x18xf32> to vector<4x16x16xf32>
    %74 = arith.addf %72, %73 : vector<4x16x16xf32>
    %75 = vector.extract_strided_slice %71 {offsets = [0, 0, 2], sizes = [4, 16, 16], strides = [1, 1, 1]} : vector<4x16x18xf32> to vector<4x16x16xf32>
    %76 = arith.addf %74, %75 : vector<4x16x16xf32>
    %cst_7 = arith.constant 0.111111112 : f32
    %77 = vector.broadcast %cst_7 : f32 to vector<4x16x16xf32>
    %78 = arith.mulf %76, %77 : vector<4x16x16xf32>
    %79 = arith.mulf %40, %40 : vector<4x16x16xf32>
    %80 = arith.subf %78, %79 : vector<4x16x16xf32>
    %81 = vector.extract_strided_slice %4 {offsets = [0, 1, 0], sizes = [4, 1, 16], strides = [1, 1, 1]} : vector<4x16x16xf32> to vector<4x1x16xf32>
    %82 = vector.extract_strided_slice %4 {offsets = [0, 14, 0], sizes = [4, 1, 16], strides = [1, 1, 1]} : vector<4x16x16xf32> to vector<4x1x16xf32>
    %83 = tpu.concatenate %81, %4, %82 in 1 : vector<4x1x16xf32>, vector<4x16x16xf32>, vector<4x1x16xf32> -> vector<4x18x16xf32>
    %84 = vector.extract_strided_slice %83 {offsets = [0, 0, 0], sizes = [4, 16, 16], strides = [1, 1, 1]} : vector<4x18x16xf32> to vector<4x16x16xf32>
    %85 = vector.extract_strided_slice %83 {offsets = [0, 1, 0], sizes = [4, 16, 16], strides = [1, 1, 1]} : vector<4x18x16xf32> to vector<4x16x16xf32>
    %86 = arith.addf %84, %85 : vector<4x16x16xf32>
    %87 = vector.extract_strided_slice %83 {offsets = [0, 2, 0], sizes = [4, 16, 16], strides = [1, 1, 1]} : vector<4x18x16xf32> to vector<4x16x16xf32>
    %88 = arith.addf %86, %87 : vector<4x16x16xf32>
    %89 = vector.extract_strided_slice %88 {offsets = [0, 0, 1], sizes = [4, 16, 1], strides = [1, 1, 1]} : vector<4x16x16xf32> to vector<4x16x1xf32>
    %90 = vector.extract_strided_slice %88 {offsets = [0, 0, 14], sizes = [4, 16, 1], strides = [1, 1, 1]} : vector<4x16x16xf32> to vector<4x16x1xf32>
    %91 = tpu.concatenate %89, %88, %90 in 2 : vector<4x16x1xf32>, vector<4x16x16xf32>, vector<4x16x1xf32> -> vector<4x16x18xf32>
    %92 = vector.extract_strided_slice %91 {offsets = [0, 0, 0], sizes = [4, 16, 16], strides = [1, 1, 1]} : vector<4x16x18xf32> to vector<4x16x16xf32>
    %93 = vector.extract_strided_slice %91 {offsets = [0, 0, 1], sizes = [4, 16, 16], strides = [1, 1, 1]} : vector<4x16x18xf32> to vector<4x16x16xf32>
    %94 = arith.addf %92, %93 : vector<4x16x16xf32>
    %95 = vector.extract_strided_slice %91 {offsets = [0, 0, 2], sizes = [4, 16, 16], strides = [1, 1, 1]} : vector<4x16x18xf32> to vector<4x16x16xf32>
    %96 = arith.addf %94, %95 : vector<4x16x16xf32>
    %cst_8 = arith.constant 0.111111112 : f32
    %97 = vector.broadcast %cst_8 : f32 to vector<4x16x16xf32>
    %98 = arith.mulf %96, %97 : vector<4x16x16xf32>
    %99 = arith.mulf %22, %40 : vector<4x16x16xf32>
    %100 = arith.subf %98, %99 : vector<4x16x16xf32>
    %cst_9 = arith.constant 2.000000e+00 : f32
    %101 = vector.broadcast %cst_9 : f32 to vector<4x16x16xf32>
    %102 = arith.mulf %101, %22 : vector<4x16x16xf32>
    %103 = arith.mulf %102, %40 : vector<4x16x16xf32>
    %cst_10 = arith.constant 9.99999974E-5 : f32
    %104 = vector.broadcast %cst_10 : f32 to vector<4x16x16xf32>
    %105 = arith.addf %103, %104 : vector<4x16x16xf32>
    %cst_11 = arith.constant 2.000000e+00 : f32
    %106 = vector.broadcast %cst_11 : f32 to vector<4x16x16xf32>
    %107 = arith.mulf %106, %100 : vector<4x16x16xf32>
    %cst_12 = arith.constant 8.99999984E-4 : f32
    %108 = vector.broadcast %cst_12 : f32 to vector<4x16x16xf32>
    %109 = arith.addf %107, %108 : vector<4x16x16xf32>
    %110 = arith.mulf %105, %109 : vector<4x16x16xf32>
    %111 = arith.mulf %22, %22 : vector<4x16x16xf32>
    %112 = arith.mulf %40, %40 : vector<4x16x16xf32>
    %113 = arith.addf %111, %112 : vector<4x16x16xf32>
    %cst_13 = arith.constant 9.99999974E-5 : f32
    %114 = vector.broadcast %cst_13 : f32 to vector<4x16x16xf32>
    %115 = arith.addf %113, %114 : vector<4x16x16xf32>
    %116 = arith.addf %60, %80 : vector<4x16x16xf32>
    %cst_14 = arith.constant 8.99999984E-4 : f32
    %117 = vector.broadcast %cst_14 : f32 to vector<4x16x16xf32>
    %118 = arith.addf %116, %117 : vector<4x16x16xf32>
    %119 = arith.mulf %115, %118 : vector<4x16x16xf32>
    %120 = tpu.reciprocal %119 {approx = true} : vector<4x16x16xf32> -> vector<4x16x16xf32>
    %121 = arith.mulf %110, %120 : vector<4x16x16xf32>
    %cst_15 = arith.constant 1.000000e+00 : f32
    %122 = vector.broadcast %cst_15 : f32 to vector<4x16x16xf32>
    %123 = arith.subf %122, %121 : vector<4x16x16xf32>
    %cst_16 = arith.constant 5.000000e-01 : f32
    %124 = vector.broadcast %cst_16 : f32 to vector<4x16x16xf32>
    %125 = arith.mulf %123, %124 : vector<4x16x16xf32>
    %cst_17 = arith.constant 0.000000e+00 : f32
    %cst_18 = arith.constant 1.000000e+00 : f32
    %126 = vector.broadcast %cst_17 : f32 to vector<4x16x16xf32>
    %127 = arith.maximumf %126, %125 : vector<4x16x16xf32>
    %128 = vector.broadcast %cst_18 : f32 to vector<4x16x16xf32>
    %129 = arith.minimumf %128, %127 : vector<4x16x16xf32>
    %c0_19 = arith.constant 0 : index
    %c0_20 = arith.constant 0 : index
    %c0_21 = arith.constant 0 : index
    %130 = vector.load %arg3[%c0_19, %c0_20, %c0_21] : memref<4x16x16xf32, #tpu.memory_space<vmem>>, vector<4x16x16xf32>
    tpu.vector_store %arg3[%c0_19, %c0_20, %c0_21], %129 {strides = array<i32>} : memref<4x16x16xf32, #tpu.memory_space<vmem>>, vector<4x16x16xf32>,
    return
  }
  func.func @transform_0(%arg0: i32) -> (i32, i32, i32) {
    %c0_i32 = arith.constant 0 : i32
    %c0_i32_0 = arith.constant 0 : i32
    %c0_i32_1 = arith.constant 0 : i32
    return %arg0, %c0_i32, %c0_i32_0 : i32, i32, i32
  }
  func.func @transform_1(%arg0: i32) -> (i32, i32, i32) {
    %c0_i32 = arith.constant 0 : i32
    %c0_i32_0 = arith.constant 0 : i32
    %c0_i32_1 = arith.constant 0 : i32
    return %arg0, %c0_i32, %c0_i32_0 : i32, i32, i32
  }
  func.func @transform_2(%arg0: i32) -> (i32, i32, i32) {
    %c0_i32 = arith.constant 0 : i32
    %c0_i32_0 = arith.constant 0 : i32
    %c0_i32_1 = arith.constant 0 : i32
    return %arg0, %c0_i32, %c0_i32_0 : i32, i32, i32
  }
}

</mosaic_0001>

<bundles_post_ra>
// kernel: tpu_custom_call.1
= control target key start
LH: loop header
LB: loop body
LE: loop exit
PB: predicated region body
PF: predicated region fallthrough
CT: control target
= control target key end

     0   :  { %7 = vsyncpa [#allocation3], 0  ;;  %s3802_s0 = inlined_call_operand.hbm [shape: f32[8,16,16], index: 0, kind: input, shape index: {}]   ;;  %s3803_s1 = inlined_call_operand.hbm [shape: f32[8,16,16], index: 1, kind: input, shape index: {}]   ;;  %s3804_s2 = inlined_call_operand.hbm [shape: f32[8,16,16], index: 2, kind: output, shape index: {}]  }
   0x1   :  { %9 = vsyncpa [#allocation3 + $0x1], 0 }
   0x2   :  { %10 = vsyncpa [#allocation6], 0 }
   0x3   :  { %12 = vsyncpa [#allocation6 + $0x1], 0 }
   0x4   :  { %13 = vsyncpa [#allocation4], 0 }
   0x5   :  { %15 = vsyncpa [#allocation4 + $0x1], 0  ;;  %s2386_s9 = smov 0   ;;  %s2388_s10 = smov 0  }
   0x6   :  { %s2390_s11 = smov 0   ;;  %s2392_s12 = smov 0  }
   0x7 LB: > { %s2407_s13 = sadd.s32 4294967295, %s2358_s12   ;;  %s2116_s14 = sadd.s32 4294967294, %s2358_s12   ;;  %s2358_s12 = sphi %s2392_s12, %s3936_s12   ;;  %s2354_s11 = sphi %s2390_s11, %s3935_s11   ;;  %s2350_s10 = sphi %s2388_s10, %s3934_s10   ;;  %s2346_s9 = sphi %s2386_s9, %s3933_s9  }
   0x8   : > { %s2411_s15 = sadd.s32 1, %s2358_s12   ;;  %s28_s16 = sadd.s32 1, %s2354_s11 }
   0x9   : > { %s25_s17 = ssub.s32 %s2358_s12, %s2411_s15  ;;  %p35_p0 = scmp.ne.s32.totalorder %s2354_s11, %s2350_s10 }
   0xa   : > { %p26_p1 = scmp.eq.s32.totalorder %s25_s17, 0  ;;  %p36_p2 = scmp.eq.s32.totalorder %s2358_s12, 0 }
   0xb   : > { %p41_p3 = scmp.ne.s32.totalorder %s2350_s10, %s2346_s9  ;;  %p42_p4 = scmp.eq.s32.totalorder %s2407_s13, 0 }
   0xc   : > { %s2423_s18 = scalar_select %p26_p1, %s2354_s11, %s28_s16  }
   0xd   : > { %p2425_p5 = por %p36_p2, %p35_p0  ;;  %p2429_p6 = por %p42_p4, %p41_p3 }
   0xe   : > { %p91_p7 = scmp.eq.s32.totalorder %s2407_s13, 1  ;;  %p97_p8 = scmp.eq.s32.totalorder %s2116_s14, 1 }
   0xf   : > { %s3832_s20 = scalar_select %p2429_p6, 1, 0 }
  0x10   : > { %p2160_p10 = scmp.lt.s32.totalorder %s2358_s12, 2  ;;  %p2436_p11 = por %p91_p7, %p35_p0 }
  0x11   : > { %p2440_p12 = por %p97_p8, %p41_p3  ;;  %s2445_s23 = sand.u32 1, %s2354_s11  }
  0x12   : > { %s3833_s21 = scalar_select %p2436_p11, 1, 0 }
  0x13   : > { %s3834_s22 = scalar_select %p2440_p12, 1, 0 }
  0x14   : > { %s2138_s24 = sshll.u32 %s2358_s12, 10  ;;  %s2119_s25 = sshll.u32 %s2445_s23, 6 }
  0x15   : > { %s2454_s28 = scalar_lea.hbm %s3802_s0, %s2138_s24  ;;  %s121_s29 = scalar_lea.vmem [#allocation2], %s2119_s25 }
  0x16   : > { %s129_s30 = sshll.u32 %s121_s29, 4  ;;  %p2460_p13 = pnand %p2160_p10, %p2425_p5  ;;  %s2464_s30 = int_to_ptr.vmem [resolvable:$true] %s129_s30 }
  0x17   : > { %s118_s4 = scalar_lea.sflag [#allocation3], %s2445_s23  ;;  %s2234_s5 = scalar_lea.hbm %s2454_s28, 1024 }
  0x18   : > { %p2235_p0 = scmp.ne.s32.totalorder %s2454_s28, %s2234_s5  ;;  %p2236_p1 = pneg %p2460_p13 }
  0x19   : > { %s2239_s8 = scalar_lea.hbm %s3802_s0, 2048  ;;  %p2240_p4 = scmp.lt.s32.totalorder %s2454_s28, %s3802_s0 }
  0x1a   : > { %p2237_p2 = pnand %p2236_p1, %p2235_p0  ;;  %p2241_p5 = scmp.lt.s32.totalorder %s2239_s8, %s2234_s5 }
  0x1c   : > { %p2238_p3 = pneg %p2237_p2  ;;  %p2242_p7 = por %p2241_p5, %p2240_p4 }
  0x1e   : > { %p2243_p8 = pnand %p2242_p7, %p2238_p3 }
  0x20   : > { %2246 = shalt.err (!%p2243_p8)
}
  0x21   : > { %s2247_s17 = scalar_lea.vmem %s2464_s30, 1024  ;;  %s2360_s19 = smov [#allocation2]  }
  0x22   : > { %p2248_p10 = scmp.ne.s32.totalorder %s2464_s30, %s2247_s17  ;;  %s2252_s26 = sshll.u32 %s2360_s19, 4  ;;  %s2253_s26 = int_to_ptr.vmem [resolvable:$false] %s2252_s26 }
  0x23   : > { %s2254_s27 = scalar_lea.vmem %s2253_s26, 2048  ;;  %p2255_p9 = scmp.lt.s32.totalorder %s2464_s30, %s2253_s26 }
  0x24   : > { %p2250_p0 = pnand %p2248_p10, %p2236_p1  ;;  %p2256_p12 = scmp.lt.s32.totalorder %s2254_s27, %s2247_s17 }
  0x26   : > { %p2251_p2 = pneg %p2250_p0  ;;  %p2257_p11 = por %p2256_p12, %p2255_p9 }
  0x28   : > { %p2258_p4 = pnand %p2257_p11, %p2251_p2 }
  0x2a   : > { %2261 = shalt.err (!%p2258_p4)
}
  0x2b   : > { %s2361_s29 = smov 128   ;;  %s2362_s5 = smov 8  }
  0x2c   : > { %2152 = dma.hbm_to_vmem [thread:$0]  (!%p2460_p13), %s2454_s28, 1024, %s2464_s30, %s118_s4, %s2361_s29, %s2361_s29, %s2362_s5  }
  0x2d   : > { %p2127_p9 = scmp.ge.s32.totalorder %s2358_s12, 1  ;;  %p159_p11 = scmp.lt.s32.totalorder %s2358_s12, 3 }
  0x2e   : > { %s2507_s14 = scalar_lea.hbm %s3803_s1, %s2138_s24  ;;  %s143_s16 = scalar_lea.vmem [#allocation5], %s2119_s25 }
  0x2f   : > { %p2498_p12 = pnand %p2127_p9, %p159_p11  ;;  %s151_s17 = sshll.u32 %s143_s16, 4  ;;  %s2511_s17 = int_to_ptr.vmem [resolvable:$true] %s151_s17 }
  0x30   : > { %s140_s28 = scalar_lea.sflag [#allocation6], %s2445_s23  ;;  %s2262_s30 = scalar_lea.hbm %s2507_s14, 1024 }
  0x31   : > { %p2263_p3 = scmp.ne.s32.totalorder %s2507_s14, %s2262_s30  ;;  %s2267_s24 = scalar_lea.hbm %s3803_s1, 2048 }
  0x32   : > { %p2268_p8 = scmp.lt.s32.totalorder %s2507_s14, %s3803_s1  ;;  %p2269_p10 = scmp.lt.s32.totalorder %s2267_s24, %s2262_s30 }
  0x33   : > { %p2265_p5 = pnand %p2263_p3, %p2236_p1 }
  0x34   : > { %p2270_p0 = por %p2269_p10, %p2268_p8 }
  0x35   : > { %p2266_p7 = pneg %p2265_p5 }
  0x37   : > { %p2271_p2 = pnand %p2270_p0, %p2266_p7 }
  0x39   : > { %2274 = shalt.err (!%p2271_p2)
}
  0x3a   : > { %s2275_s23 = scalar_lea.vmem %s2511_s17, 1024  ;;  %s2363_s25 = smov [#allocation5]  }
  0x3b   : > { %p2276_p4 = scmp.ne.s32.totalorder %s2511_s17, %s2275_s23  ;;  %s2280_s7 = sshll.u32 %s2363_s25, 4  ;;  %s2281_s7 = int_to_ptr.vmem [resolvable:$false] %s2280_s7 }
  0x3c   : > { %s2282_s8 = scalar_lea.vmem %s2281_s7, 2048  ;;  %p2283_p3 = scmp.lt.s32.totalorder %s2511_s17, %s2281_s7 }
  0x3d   : > { %p2278_p9 = pnand %p2276_p4, %p2236_p1  ;;  %p2284_p5 = scmp.lt.s32.totalorder %s2282_s8, %s2275_s23 }
  0x3f   : > { %p2279_p11 = pneg %p2278_p9  ;;  %p2285_p6 = por %p2284_p5, %p2283_p3 }
  0x41   : > { %p2286_p8 = pnand %p2285_p6, %p2279_p11 }
  0x43   : > { %2289 = shalt.err (!%p2286_p8)
}
  0x44   : > { %2155 = dma.hbm_to_vmem [thread:$0]  (!%p2460_p13), %s2507_s14, 1024, %s2511_s17, %s140_s28, %s2361_s29, %s2361_s29, %s2362_s5  }
  0x45   : > { %163 = sbr.rel (%p2498_p12) target bundleno = 877 (0x36d), region = 28 }
  0x4a   : > { %s2542_s16 = sand.u32 1, %s2350_s10   ;;  %p3837_p6 = scmp.ne.s32.totalorder %s3832_s20, 0 }
  0x4b   : > { %s2545_s30 = sshll.u32 %s2542_s16, 6  ;;  %s166_s4 = scalar_lea.sflag [#allocation3], %s2542_s16 }
  0x4c   : > { %s2549_s3 = scalar_lea.vmem [#allocation2], %s2545_s30 }
  0x4d   : > { %2333 = dma.done.wait (%p3837_p6), %s166_s4, 1024  }
  0x4e   : > { %2335 = vsyncadd (%p3837_p6), %s166_s4, 4294966272  ;;  %s175_s29 = scalar_lea.sflag [#allocation6], %s2542_s16  ;;  %s2557_s5 = scalar_lea.vmem [#allocation5], %s2545_s30 }
  0x4f   : > { %2337 = dma.done.wait (%p3837_p6), %s175_s29, 1024  }
  0x50   : > { %2339 = vsyncadd (%p3837_p6), %s175_s29, 4294966272  ;;  %v2564_v0 = vld [vmem:[%s2549_s3 + $0x10] sm:$0xff]  ;;  %v2567_v1 = vld [vmem:[%s2549_s3 + $0x18] sm:$0xff]  ;;  %vm263_vm0 = vcmask 1040384   ;;  %vm312_vm1 = vcmask 1046528   ;;  %vm349_vm2 = vcmask 1045504  }
  0x51   : > { %v2570_v2 = vld [vmem:[%s2549_s3] sm:$0xff]  ;;  %v252_v3 = vrot.slane %v2564_v0, 1  ;;  %v267_v4 = vrot.slane %v2564_v0, 7  ;;  %v268_v5 = vrot.slane %v2567_v1, 7  ;;  %v2576_v6 = vld [vmem:[%s2549_s3 + $0x8] sm:$0xff]  ;;  %v289_v11 = vrot.slane %v2567_v1, 5 }
  0x52   : > { %v251_v7 = vrot.slane %v2570_v2, 1  ;;  %v2580_v8 = vld [vmem:[%s2549_s3 + $0x20] sm:$0xff]  ;;  %v264_v9 = vrot.slane %v2570_v2, 7  ;;  %v265_v10 = vrot.slane %v2576_v6, 7  ;;  %v288_v12 = vrot.slane %v2576_v6, 5  ;;  %v2587_v13 = vld [vmem:[%s2549_s3 + $0x28] sm:$0xff] }
  0x53   : > { %v269_v14 = vsel %vm263_vm0, %v267_v4, %v268_v5  ;;  %v297_v15 = vsel %vm263_vm0, %v252_v3, %v267_v4  ;;  %v270_v16 = vrot.slane %v2580_v8, 7  ;;  %v271_v17 = vrot.slane %v2587_v13, 7  ;;  %v2608_v46 = vld [vmem:[%s2549_s3 + $0x30] sm:$0xff]  ;;  %v2611_v47 = vld [vmem:[%s2549_s3 + $0x38] sm:$0xff]  ;;  %s2364_s20 = smov 127   ;;  %s2365_s6 = smov 1  }
  0x54   : > { %v318_v18 = vrot.slane %v297_v15, 1  ;;  %v319_v19 = vrot.slane %v269_v14, 1  ;;  %v355_v20 = vrot.slane %v297_v15, 2  ;;  %v356_v21 = vrot.slane %v269_v14, 2  ;;  %s2366_s14 = smov 3   ;;  %s2367_s17 = smov 126  }
  0x55   : > { %v266_v22 = vsel %vm263_vm0, %v264_v9, %v265_v10  ;;  %v296_v23 = vsel %vm263_vm0, %v251_v7, %v264_v9  ;;  %v301_v24 = vsel %vm263_vm0, %v268_v5, %v289_v11  ;;  %v300_v25 = vsel %vm263_vm0, %v265_v10, %v288_v12  ;;  %s3732_s28 = scalar_lea.vmem [#allocation7], %s2545_s30  ;;  %s2142_s19 = sshll.u32 %s2407_s13, 10 }
  0x56   : > { %v320_v26 = vsel %vm312_vm1, %v318_v18, %v319_v19  ;;  %v357_v27 = vsel %vm349_vm2, %v355_v20, %v356_v21  ;;  %v313_v28 = vrot.slane %v296_v23, 1  ;;  %v314_v29 = vrot.slane %v266_v22, 1  ;;  %s2020_s24 = sshll.u32 %s3732_s28, 4  ;;  %s3753_s23 = scalar_lea.hbm %s3804_s2, %s2142_s19  ;;  %s3755_s24 = int_to_ptr.vmem [resolvable:$true] %s2020_s24 }
  0x57   : > { %v343_v30 = vadd.f32 %v320_v26, %v297_v15  ;;  %v350_v31 = vrot.slane %v296_v23, 2  ;;  %v351_v32 = vrot.slane %v266_v22, 2  ;;  %v321_v33 = vrot.slane %v301_v24, 1  ;;  %s2006_s13 = scalar_lea.sflag [#allocation4], %s2542_s16  ;;  %s2290_s25 = scalar_lea.vmem %s3755_s24, 1024 }
  0x58   : > { %v315_v34 = vsel %vm312_vm1, %v313_v28, %v314_v29  ;;  %v358_v35 = vrot.slane %v301_v24, 2  ;;  %v316_v36 = vrot.slane %v300_v25, 1  ;;  %v353_v37 = vrot.slane %v300_v25, 2  ;;  %p2291_p13 = scmp.ne.s32.totalorder %s3755_s24, %s2290_s25  ;;  %p3930_p1 = scmp.ne.s32.totalorder %s3833_s21, 0 }
  0x59   : > { %v2600_v38 = vadd.f32 %v357_v27, %v343_v30  ;;  %v341_v39 = vadd.f32 %v315_v34, %v296_v23  ;;  %v352_v40 = vsel %vm349_vm2, %v350_v31, %v351_v32  ;;  %v322_v41 = vsel %vm312_vm1, %v319_v19, %v321_v33  ;;  %v2670_v34 = vld [vmem:[%s2557_s5] sm:$0xff]  ;;  %s2368_s7 = smov [#allocation7]  }
  0x5a   : > { %v344_v42 = vadd.f32 %v322_v41, %v269_v14  ;;  %v359_v43 = vsel %vm349_vm2, %v356_v21, %v358_v35  ;;  %v317_v44 = vsel %vm312_vm1, %v314_v29, %v316_v36  ;;  %v354_v45 = vsel %vm349_vm2, %v351_v32, %v353_v37  ;;  %v2673_v35 = vld [vmem:[%s2557_s5 + $0x8] sm:$0xff]  ;;  %v2688_v41 = vld [vmem:[%s2557_s5 + $0x18] sm:$0xff]  ;;  %p2292_p12 = pnand %p2291_p13, %p3930_p1  ;;  %s2294_s8 = sshll.u32 %s2368_s7, 4  ;;  %s2295_s8 = int_to_ptr.vmem [resolvable:$false] %s2294_s8 }
  0x5b   : > { %398 = vrot.lane.b32.xlu1 %v2600_v38, %s2364_s20  ;;  %v2615_v48 = vadd.f32 %v352_v40, %v341_v39  ;;  %v342_v49 = vadd.f32 %v317_v44, %v266_v22  ;;  %v272_v50 = vsel %vm263_vm0, %v270_v16, %v271_v17  ;;  %v290_v51 = vrot.slane %v2587_v13, 5  ;;  %v2685_v40 = vld [vmem:[%s2557_s5 + $0x10] sm:$0xff]  ;;  %s2296_s30 = scalar_lea.vmem %s2295_s8, 2048  ;;  %p2297_p10 = scmp.lt.s32.totalorder %s3755_s24, %s2295_s8 }
  0x5c   : > { %v2619_v52 = vadd.f32 %v359_v43, %v344_v42  ;;  %v324_v53 = vrot.slane %v272_v50, 1  ;;  %v361_v54 = vrot.slane %v272_v50, 2  ;;  %v253_v55 = vrot.slane %v2580_v8, 1  ;;  %p2293_p7 = pneg %p2292_p12  ;;  %p2298_p0 = scmp.lt.s32.totalorder %s2296_s30, %s2290_s25 }
  0x5d   : > { %394 = vrot.lane.b32.xlu0 %v2615_v48, %s2364_s20  ;;  %v2624_v56 = vadd.f32 %v354_v45, %v342_v49  ;;  %v302_v57 = vsel %vm263_vm0, %v271_v17, %v290_v51  ;;  %v273_v58 = vrot.slane %v2608_v46, 7  ;;  %v274_v59 = vrot.slane %v2611_v47, 7 }
  0x5e   : > { %v326_v60 = vrot.slane %v302_v57, 1  ;;  %v363_v61 = vrot.slane %v302_v57, 2  ;;  %v298_v62 = vsel %vm263_vm0, %v253_v55, %v270_v16  ;;  %v291_v63 = vrot.slane %v2611_v47, 5  ;;  %v2703_v57 = vld [vmem:[%s2557_s5 + $0x20] sm:$0xff]  ;;  %p2299_p2 = por %p2298_p0, %p2297_p10 }
  0x5f   : > { %400 = vrot.lane.b32.xlu1 %v2619_v52, %s2364_s20  ;;  %v323_v3 = vrot.slane %v298_v62, 1  ;;  %v360_v4 = vrot.slane %v298_v62, 2  ;;  %v275_v5 = vsel %vm263_vm0, %v273_v58, %v274_v59  ;;  %v254_v7 = vrot.slane %v2608_v46, 1 }
  0x60   : > { %v327_v9 = vsel %vm312_vm1, %v324_v53, %v326_v60  ;;  %v364_v10 = vsel %vm349_vm2, %v361_v54, %v363_v61  ;;  %v303_v11 = vsel %vm263_vm0, %v274_v59, %v291_v63  ;;  %v329_v12 = vrot.slane %v275_v5, 1  ;;  %p2300_p4 = pnand %p2299_p2, %p2293_p7 }
  0x61   : > { %396 = vrot.lane.b32.xlu0 %v2624_v56, %s2364_s20  ;;  %v346_v14 = vadd.f32 %v327_v9, %v272_v50  ;;  %v325_v15 = vsel %vm312_vm1, %v323_v3, %v324_v53  ;;  %v362_v16 = vsel %vm349_vm2, %v360_v4, %v361_v54  ;;  %v331_v17 = vrot.slane %v303_v11, 1  ;;  %v2721_v9 = vld [vmem:[%s2557_s5 + $0x30] sm:$0xff] }
  0x62   : > { %v345_v18 = vadd.f32 %v325_v15, %v298_v62  ;;  %v366_v19 = vrot.slane %v275_v5, 2  ;;  %v368_v20 = vrot.slane %v303_v11, 2  ;;  %v299_v21 = vsel %vm263_vm0, %v254_v7, %v273_v58  ;;  %v2706_v58 = vld [vmem:[%s2557_s5 + $0x28] sm:$0xff] }
  0x63   : > { %v2643_v22 = vadd.f32 %v364_v10, %v346_v14  ;;  %v332_v23 = vsel %vm312_vm1, %v329_v12, %v331_v17  ;;  %v328_v24 = vrot.slane %v299_v21, 1  ;;  %v365_v25 = vrot.slane %v299_v21, 2  ;;  %v2724_v10 = vld [vmem:[%s2557_s5 + $0x38] sm:$0xff] }
  0x64   : > { %v2646_v26 = vadd.f32 %v362_v16, %v345_v18  ;;  %v348_v27 = vadd.f32 %v332_v23, %v275_v5  ;;  %v369_v28 = vsel %vm349_vm2, %v366_v19, %v368_v20  ;;  %v580_v36 = vrot.slane %v2670_v34, 7 }
  0x65   : > { %404 = vrot.lane.b32.xlu1 %v2643_v22, %s2364_s20  ;;  %v330_v29 = vsel %vm312_vm1, %v328_v24, %v329_v12  ;;  %v367_v30 = vsel %vm349_vm2, %v365_v25, %v366_v19  ;;  %v581_v37 = vrot.slane %v2673_v35, 7  ;;  %v604_v39 = vrot.slane %v2673_v35, 5 }
  0x66   : > { %402 = vrot.lane.b32.xlu0 %v2646_v26, %s2364_s20  ;;  %v2655_v31 = vadd.f32 %v369_v28, %v348_v27  ;;  %v347_v32 = vadd.f32 %v330_v29, %v299_v21  ;;  %v568_v42 = vrot.slane %v2670_v34, 1  ;;  %v583_v45 = vrot.slane %v2685_v40, 7 }
  0x67   : > { %v582_v43 = vsel %vm263_vm0, %v580_v36, %v581_v37  ;;  %v616_v44 = vsel %vm263_vm0, %v581_v37, %v604_v39  ;;  %v584_v49 = vrot.slane %v2688_v41, 7  ;;  %v605_v50 = vrot.slane %v2688_v41, 5 }
  0x68   : > { %v2657_v33 = vadd.f32 %v367_v30, %v347_v32  ;;  %v629_v51 = vrot.slane %v582_v43, 1  ;;  %v631_v53 = vrot.slane %v616_v44, 1  ;;  %v612_v54 = vsel %vm263_vm0, %v568_v42, %v580_v36 }
  0x69   : > { %408 = vrot.lane.b32.xlu1 %v2655_v31, %s2364_s20  ;;  %v569_v55 = vrot.slane %v2685_v40, 1  ;;  %v585_v59 = vsel %vm263_vm0, %v583_v45, %v584_v49  ;;  %v628_v60 = vrot.slane %v612_v54, 1  ;;  %v617_v61 = vsel %vm263_vm0, %v584_v49, %v605_v50 }
  0x6a   : > { %406 = vrot.lane.b32.xlu0 %v2657_v33, %s2364_s20  ;;  %v586_v62 = vrot.slane %v2703_v57, 7  ;;  %v587_v63 = vrot.slane %v2706_v58, 7  ;;  %v632_v3 = vsel %vm312_vm1, %v629_v51, %v631_v53  ;;  %v606_v5 = vrot.slane %v2706_v58, 5 }
  0x6b   : > { %v613_v4 = vsel %vm263_vm0, %v569_v55, %v583_v45  ;;  %v665_v7 = vrot.slane %v582_v43, 2  ;;  %v664_v11 = vrot.slane %v612_v54, 2  ;;  %v634_v12 = vrot.slane %v585_v59, 1 }
  0x6c   : > { %v636_v14 = vrot.slane %v617_v61, 1  ;;  %v657_v15 = vadd.f32 %v632_v3, %v582_v43  ;;  %v630_v16 = vsel %vm312_vm1, %v628_v60, %v629_v51  ;;  %v633_v17 = vrot.slane %v613_v4, 1 }
  0x6d   : > { %420 = vrot.lane.b32.xlu1 %v2624_v56, %s2365_s6  ;;  %v588_v18 = vsel %vm263_vm0, %v586_v62, %v587_v63  ;;  %v618_v19 = vsel %vm263_vm0, %v587_v63, %v606_v5  ;;  %v589_v20 = vrot.slane %v2721_v9, 7  ;;  %v590_v21 = vrot.slane %v2724_v10, 7 }
  0x6e   : > { %418 = vrot.lane.b32.xlu0 %v2615_v48, %s2365_s6  ;;  %v670_v23 = vrot.slane %v585_v59, 2  ;;  %v672_v24 = vrot.slane %v617_v61, 2  ;;  %v656_v28 = vadd.f32 %v630_v16, %v612_v54  ;;  %v666_v29 = vsel %vm349_vm2, %v664_v11, %v665_v7 }
  0x6f   : > { %v637_v30 = vsel %vm312_vm1, %v634_v12, %v636_v14  ;;  %v635_v32 = vsel %vm312_vm1, %v633_v17, %v634_v12  ;;  %v669_v36 = vrot.slane %v613_v4, 2  ;;  %v639_v37 = vrot.slane %v588_v18, 1 }
  0x70   : > { %v641_v39 = vrot.slane %v618_v19, 1  ;;  %v591_v43 = vsel %vm263_vm0, %v589_v20, %v590_v21  ;;  %v659_v45 = vadd.f32 %v637_v30, %v585_v59  ;;  %v673_v49 = vsel %vm349_vm2, %v670_v23, %v672_v24 }
  0x71   : > { %424 = vrot.lane.b32.xlu1 %v2619_v52, %s2365_s6  ;;  %v658_v51 = vadd.f32 %v635_v32, %v613_v4  ;;  %v675_v53 = vrot.slane %v588_v18, 2  ;;  %v677_v54 = vrot.slane %v618_v19, 2  ;;  %v671_v55 = vsel %vm349_vm2, %v669_v36, %v670_v23 }
  0x72   : > { %422 = vrot.lane.b32.xlu0 %v2600_v38, %s2365_s6  ;;  %v642_v60 = vsel %vm312_vm1, %v639_v37, %v641_v39  ;;  %v644_v61 = vrot.slane %v591_v43, 1  ;;  %vm466_vm3 = vcmask 7168   ;;  %vm475_vm4 = vcmask 138240  }
  0x73   : > { %v694_v5 = vadd.f32 %v671_v55, %v658_v51  ;;  %v661_v4 = vadd.f32 %v642_v60, %v588_v18  ;;  %vm1996_vm5 = vcmask 130048  }
  0x75   : > { %428 = vrot.lane.b32.xlu1 %v2643_v22, %s2365_s6 }
  0x76   : > { %426 = vrot.lane.b32.xlu0 %v2646_v26, %s2365_s6 }
  0x79   : > { %432 = vrot.lane.b32.xlu1 %v2655_v31, %s2365_s6 }
  0x7a   : > { %430 = vrot.lane.b32.xlu0 %v2657_v33, %s2365_s6 }
  0x7d   : > { %444 = vrot.lane.b32.xlu1 %v2624_v56, %s2366_s14  ;;  %v570_v56 = vrot.slane %v2703_v57, 1 }
  0x7e   : > { %442 = vrot.lane.b32.xlu0 %v2615_v48, %s2366_s14  ;;  %v667_v48 = vrot.slane %v616_v44, 2 }
  0x7f   : > { %v614_v25 = vsel %vm263_vm0, %v570_v56, %v586_v62 }
  0x80   : > { %v668_v27 = vsel %vm349_vm2, %v665_v7, %v667_v48  ;;  %v638_v42 = vrot.slane %v614_v25, 1  ;;  %v674_v63 = vrot.slane %v614_v25, 2  ;;  %v678_v7 = vsel %vm349_vm2, %v675_v53, %v677_v54 }
  0x81   : > { %448 = vrot.lane.b32.xlu1 %v2619_v52, %s2366_s14  ;;  %v607_v52 = vrot.slane %v2724_v10, 5  ;;  %v693_v44 = vadd.f32 %v668_v27, %v657_v15  ;;  %v680_v48 = vrot.slane %v591_v43, 2  ;;  %v697_v16 = vadd.f32 %v678_v7, %v661_v4 }
  0x82   : > { %446 = vrot.lane.b32.xlu0 %v2600_v38, %s2366_s14  ;;  %v571_v38 = vrot.slane %v2721_v9, 1  ;;  %v640_v62 = vsel %vm312_vm1, %v638_v42, %v639_v37  ;;  %v676_v12 = vsel %vm349_vm2, %v674_v63, %v675_v53 }
  0x84   : > { %v615_v50 = vsel %vm263_vm0, %v571_v38, %v589_v20 }
  0x85   : > { %452 = vrot.lane.b32.xlu1 %v2643_v22, %s2366_s14  ;;  %v619_v22 = vsel %vm263_vm0, %v590_v21, %v607_v52  ;;  %v643_v3 = vrot.slane %v615_v50, 1  ;;  %v679_v15 = vrot.slane %v615_v50, 2 }
  0x86   : > { %450 = vrot.lane.b32.xlu0 %v2646_v26, %s2366_s14  ;;  %v692_v26 = vadd.f32 %v666_v29, %v656_v28  ;;  %v646_v59 = vrot.slane %v619_v22, 1  ;;  %v682_v11 = vrot.slane %v619_v22, 2 }
  0x87   : > { %v645_v14 = vsel %vm312_vm1, %v643_v3, %v644_v61  ;;  %v681_v21 = vsel %vm349_vm2, %v679_v15, %v680_v48 }
  0x88   : > { %v647_v56 = vsel %vm312_vm1, %v644_v61, %v646_v59  ;;  %v683_v19 = vsel %vm349_vm2, %v680_v48, %v682_v11  ;;  %v662_v20 = vadd.f32 %v645_v14, %v615_v50 }
  0x89   : > { %456 = vrot.lane.b32.xlu1 %v2655_v31, %s2366_s14  ;;  %v695_v31 = vadd.f32 %v673_v49, %v659_v45  ;;  %v663_v17 = vadd.f32 %v647_v56, %v591_v43 }
  0x8a   : > { %454 = vrot.lane.b32.xlu0 %v2657_v33, %s2366_s14  ;;  %v660_v33 = vadd.f32 %v640_v62, %v614_v25  ;;  %v698_v23 = vadd.f32 %v681_v21, %v662_v20 }
  0x8b   : > { %v699_v52 = vadd.f32 %v683_v19, %v663_v17 }
  0x8c   : > { %v696_v18 = vadd.f32 %v676_v12, %v660_v33 }
  0x8d   : > { %710 = vrot.lane.b32.xlu1 %v693_v44, %s2364_s20 }
  0x8e   : > { %708 = vrot.lane.b32.xlu0 %v692_v26, %s2364_s20 }
  0x91   : > { %714 = vrot.lane.b32.xlu1 %v695_v31, %s2364_s20 }
  0x92   : > { %712 = vrot.lane.b32.xlu0 %v694_v5, %s2364_s20 }
  0x95   : > { %718 = vrot.lane.b32.xlu1 %v697_v16, %s2364_s20 }
  0x96   : > { %716 = vrot.lane.b32.xlu0 %v696_v18, %s2364_s20 }
  0x99   : > { %722 = vrot.lane.b32.xlu1 %v699_v52, %s2364_s20 }
  0x9a   : > { %720 = vrot.lane.b32.xlu0 %v698_v23, %s2364_s20 }
  0x9d   : > { %734 = vrot.lane.b32.xlu1 %v693_v44, %s2365_s6 }
  0x9e   : > { %732 = vrot.lane.b32.xlu0 %v692_v26, %s2365_s6 }
  0xa1   : > { %738 = vrot.lane.b32.xlu1 %v695_v31, %s2365_s6 }
  0xa2   : > { %736 = vrot.lane.b32.xlu0 %v694_v5, %s2365_s6 }
  0xa5   : > { %742 = vrot.lane.b32.xlu1 %v697_v16, %s2365_s6 }
  0xa6   : > { %740 = vrot.lane.b32.xlu0 %v696_v18, %s2365_s6 }
  0xa9   : > { %746 = vrot.lane.b32.xlu1 %v699_v52, %s2365_s6 }
  0xaa   : > { %744 = vrot.lane.b32.xlu0 %v698_v23, %s2365_s6 }
  0xad   : > { %758 = vrot.lane.b32.xlu1 %v693_v44, %s2366_s14 }
  0xae   : > { %756 = vrot.lane.b32.xlu0 %v692_v26, %s2366_s14 }
  0xb1   : > { %762 = vrot.lane.b32.xlu1 %v695_v31, %s2366_s14 }
  0xb2   : > { %760 = vrot.lane.b32.xlu0 %v694_v5, %s2366_s14 }
  0xb5   : > { %766 = vrot.lane.b32.xlu1 %v697_v16, %s2366_s14 }
  0xb6   : > { %764 = vrot.lane.b32.xlu0 %v696_v18, %s2366_s14 }
  0xb9   : > { %770 = vrot.lane.b32.xlu1 %v699_v52, %s2366_s14 }
  0xba   : > { %768 = vrot.lane.b32.xlu0 %v698_v23, %s2366_s14 }
  0xcd   : > { %v399_v24 = vpop.permute.xlu1 %398 }
  0xcf   : > { %v395_v25 = vpop.permute.xlu0 %394 }
  0xd1   : > { %v401_v38 = vpop.permute.xlu1 %400 }
  0xd3   : > { %v397_v27 = vpop.permute.xlu0 %396 }
  0xd7   : > { %v405_v28 = vpop.permute.xlu1 %404 }
  0xd8   : > { %v403_v29 = vpop.permute.xlu0 %402 }
  0xdb   : > { %v409_v30 = vpop.permute.xlu1 %408 }
  0xdc   : > { %v407_v32 = vpop.permute.xlu0 %406 }
  0xdf   : > { %v421_v36 = vpop.permute.xlu1 %420 }
  0xe0   : > { %v419_v37 = vpop.permute.xlu0 %418  ;;  %v468_v49 = vsel %vm466_vm3, %v397_v27, %v421_v36 }
  0xe1   : > { %v467_v26 = vsel %vm466_vm3, %v395_v25, %v419_v37 }
  0xe3   : > { %v425_v39 = vpop.permute.xlu1 %424 }
  0xe4   : > { %v423_v42 = vpop.permute.xlu0 %422  ;;  %v470_v55 = vsel %vm466_vm3, %v401_v38, %v425_v39 }
  0xe5   : > { %v469_v61 = vsel %vm466_vm3, %v399_v24, %v423_v42 }
  0xe7   : > { %v429_v43 = vpop.permute.xlu1 %428 }
  0xe8   : > { %v427_v22 = vpop.permute.xlu0 %426  ;;  %v472_v3 = vsel %vm466_vm3, %v405_v28, %v429_v43 }
  0xe9   : > { %v471_v5 = vsel %vm466_vm3, %v403_v29, %v427_v22 }
  0xeb   : > { %v433_v44 = vpop.permute.xlu1 %432 }
  0xec   : > { %v431_v45 = vpop.permute.xlu0 %430  ;;  %v474_v56 = vsel %vm466_vm3, %v409_v30, %v433_v44  ;;  %v223_v44 = vmul.f32 %v2570_v2, %v2570_v2 }
  0xed   : > { %v473_v11 = vsel %vm466_vm3, %v407_v32, %v431_v45  ;;  %v224_v45 = vmul.f32 %v2576_v6, %v2576_v6 }
  0xef   : > { %v445_v50 = vpop.permute.xlu1 %444  ;;  %v893_v6 = vrot.slane %v224_v45, 7 }
  0xf0   : > { %v443_v51 = vpop.permute.xlu0 %442  ;;  %v2790_v53 = vsel %vm475_vm4, %v468_v49, %v445_v50 }
  0xf1   : > { %494 = vrot.lane.b32.xlu1 %v2790_v53, %s2364_s20  ;;  %v2795_v54 = vsel %vm475_vm4, %v467_v26, %v443_v51 }
  0xf2   : > { %492 = vrot.lane.b32.xlu0 %v2795_v54, %s2364_s20 }
  0xf3   : > { %v449_v60 = vpop.permute.xlu1 %448 }
  0xf4   : > { %v447_v59 = vpop.permute.xlu0 %446  ;;  %v2802_v62 = vsel %vm475_vm4, %v470_v55, %v449_v60  ;;  %v892_v60 = vrot.slane %v223_v44, 7 }
  0xf5   : > { %498 = vrot.lane.b32.xlu1 %v2802_v62, %s2364_s20  ;;  %v2807_v63 = vsel %vm475_vm4, %v469_v61, %v447_v59  ;;  %v916_v61 = vrot.slane %v224_v45, 5  ;;  %v880_v59 = vrot.slane %v223_v44, 1 }
  0xf6   : > { %496 = vrot.lane.b32.xlu0 %v2807_v63, %s2364_s20 }
  0xf7   : > { %v453_v31 = vpop.permute.xlu1 %452 }
  0xf8   : > { %v451_v4 = vpop.permute.xlu0 %450  ;;  %v2814_v7 = vsel %vm475_vm4, %v472_v3, %v453_v31 }
  0xf9   : > { %502 = vrot.lane.b32.xlu1 %v2814_v7, %s2364_s20  ;;  %v2819_v33 = vsel %vm475_vm4, %v471_v5, %v451_v4 }
  0xfa   : > { %500 = vrot.lane.b32.xlu0 %v2819_v33, %s2364_s20 }
  0xfb   : > { %v457_v48 = vpop.permute.xlu1 %456 }
  0xfc   : > { %v455_v12 = vpop.permute.xlu0 %454  ;;  %v2826_v14 = vsel %vm475_vm4, %v474_v56, %v457_v48 }
  0xfd   : > { %506 = vrot.lane.b32.xlu1 %v2826_v14, %s2364_s20  ;;  %v2831_v15 = vsel %vm475_vm4, %v473_v11, %v455_v12  ;;  %v894_v11 = vsel %vm263_vm0, %v892_v60, %v893_v6  ;;  %v225_v12 = vmul.f32 %v2564_v0, %v2564_v0 }
  0xfe   : > { %504 = vrot.lane.b32.xlu0 %v2831_v15, %s2364_s20  ;;  %v941_v0 = vrot.slane %v894_v11, 1 }
  0xff   : > { %v711_v16 = vpop.permute.xlu1 %710 }
 0x100   : > { %v709_v17 = vpop.permute.xlu0 %708 }
 0x101   : > { %526 = vrot.lane.b32.xlu1 %v2790_v53, %s2367_s17 }
 0x102   : > { %524 = vrot.lane.b32.xlu0 %v2795_v54, %s2367_s17 }
 0x103   : > { %v715_v18 = vpop.permute.xlu1 %714 }
 0x104   : > { %v713_v19 = vpop.permute.xlu0 %712 }
 0x105   : > { %530 = vrot.lane.b32.xlu1 %v2802_v62, %s2367_s17 }
 0x106   : > { %528 = vrot.lane.b32.xlu0 %v2807_v63, %s2367_s17 }
 0x107   : > { %v719_v20 = vpop.permute.xlu1 %718 }
 0x108   : > { %v717_v21 = vpop.permute.xlu0 %716 }
 0x109   : > { %534 = vrot.lane.b32.xlu1 %v2814_v7, %s2367_s17 }
 0x10a   : > { %532 = vrot.lane.b32.xlu0 %v2819_v33, %s2367_s17 }
 0x10b   : > { %v723_v52 = vpop.permute.xlu1 %722 }
 0x10c   : > { %v721_v23 = vpop.permute.xlu0 %720 }
 0x10d   : > { %538 = vrot.lane.b32.xlu1 %v2826_v14, %s2367_s17 }
 0x10e   : > { %536 = vrot.lane.b32.xlu0 %v2831_v15, %s2367_s17 }
 0x10f   : > { %v735_v24 = vpop.permute.xlu1 %734 }
 0x110   : > { %v733_v25 = vpop.permute.xlu0 %732  ;;  %v781_v36 = vsel %vm466_vm3, %v711_v16, %v735_v24  ;;  %v928_v16 = vsel %vm263_vm0, %v893_v6, %v916_v61 }
 0x111   : > { %v780_v39 = vsel %vm466_vm3, %v709_v17, %v733_v25  ;;  %v924_v17 = vsel %vm263_vm0, %v880_v59, %v892_v60  ;;  %v979_v6 = vrot.slane %v928_v16, 2 }
 0x112   : > { %v976_v59 = vrot.slane %v924_v17, 2 }
 0x113   : > { %v739_v38 = vpop.permute.xlu1 %738 }
 0x114   : > { %v737_v27 = vpop.permute.xlu0 %736  ;;  %v783_v49 = vsel %vm466_vm3, %v715_v18, %v739_v38  ;;  %v226_v18 = vmul.f32 %v2567_v1, %v2567_v1 }
 0x115   : > { %v782_v26 = vsel %vm466_vm3, %v713_v19, %v737_v27  ;;  %v943_v27 = vrot.slane %v928_v16, 1 }
 0x116   : > { %v896_v1 = vrot.slane %v226_v18, 7 }
 0x117   : > { %v743_v28 = vpop.permute.xlu1 %742 }
 0x118   : > { %v741_v29 = vpop.permute.xlu0 %740  ;;  %v785_v3 = vsel %vm466_vm3, %v719_v20, %v743_v28  ;;  %v940_v28 = vrot.slane %v924_v17, 1 }
 0x119   : > { %v784_v5 = vsel %vm466_vm3, %v717_v21, %v741_v29  ;;  %v895_v29 = vrot.slane %v225_v12, 7 }
 0x11b   : > { %v747_v30 = vpop.permute.xlu1 %746 }
 0x11c   : > { %v745_v32 = vpop.permute.xlu0 %744  ;;  %v787_v19 = vsel %vm466_vm3, %v723_v52, %v747_v30  ;;  %v881_v52 = vrot.slane %v225_v12, 1  ;;  %v228_v30 = vmul.f32 %v2587_v13, %v2587_v13 }
 0x11d   : > { %v786_v21 = vsel %vm466_vm3, %v721_v23, %v745_v32  ;;  %v227_v23 = vmul.f32 %v2580_v8, %v2580_v8  ;;  %v917_v32 = vrot.slane %v226_v18, 5 }
 0x11e   : > { %v899_v8 = vrot.slane %v228_v30, 7  ;;  %v918_v13 = vrot.slane %v228_v30, 5 }
 0x11f   : > { %v759_v37 = vpop.permute.xlu1 %758  ;;  %v898_v44 = vrot.slane %v227_v23, 7  ;;  %v929_v45 = vsel %vm263_vm0, %v896_v1, %v917_v32 }
 0x120   : > { %v757_v42 = vpop.permute.xlu0 %756  ;;  %v2854_v43 = vsel %vm475_vm4, %v781_v36, %v759_v37  ;;  %v944_v36 = vsel %vm312_vm1, %v941_v0, %v943_v27  ;;  %v942_v37 = vsel %vm312_vm1, %v940_v28, %v941_v0 }
 0x121   : > { %3838 = vst [vmem:[#allocation11_spill] sm:$0xff] %v2854_v43  ;;  %806 = vrot.lane.b32.xlu1 %v2854_v43, %s2364_s20  ;;  %v2859_v22 = vsel %vm475_vm4, %v780_v39, %v757_v42  ;;  %v897_v39 = vsel %vm263_vm0, %v895_v29, %v896_v1  ;;  %v925_v42 = vsel %vm263_vm0, %v881_v52, %v895_v29 }
 0x122   : > { %3839 = vst [vmem:[#allocation12_spill] sm:$0xff] %v2859_v22  ;;  %804 = vrot.lane.b32.xlu0 %v2859_v22, %s2364_s20  ;;  %v969_v60 = vadd.f32 %v944_v36, %v894_v11  ;;  %v968_v61 = vadd.f32 %v942_v37, %v924_v17 }
 0x123   : > { %v763_v50 = vpop.permute.xlu1 %762 }
 0x124   : > { %v761_v51 = vpop.permute.xlu0 %760  ;;  %v2870_v55 = vsel %vm475_vm4, %v783_v49, %v763_v50  ;;  %v229_v49 = vmul.f32 %v2608_v46, %v2608_v46  ;;  %v230_v50 = vmul.f32 %v2611_v47, %v2611_v47  ;;  %v900_v46 = vsel %vm263_vm0, %v898_v44, %v899_v8 }
 0x125   : > { %3840 = vst [vmem:[#allocation13_spill] sm:$0xff] %v2870_v55  ;;  %810 = vrot.lane.b32.xlu1 %v2870_v55, %s2364_s20  ;;  %v2875_v2 = vsel %vm475_vm4, %v782_v26, %v761_v51  ;;  %v977_v26 = vrot.slane %v894_v11, 2  ;;  %v882_v51 = vrot.slane %v227_v23, 1  ;;  %v951_v28 = vrot.slane %v900_v46, 1 }
 0x126   : > { %3841 = vst [vmem:[#allocation14_spill] sm:$0xff] %v2875_v2  ;;  %808 = vrot.lane.b32.xlu0 %v2875_v2, %s2364_s20  ;;  %v901_v47 = vrot.slane %v229_v49, 7  ;;  %v902_v12 = vrot.slane %v230_v50, 7  ;;  %v919_v18 = vrot.slane %v230_v50, 5  ;;  %v883_v16 = vrot.slane %v229_v49, 1 }
 0x127   : > { %v767_v31 = vpop.permute.xlu1 %766  ;;  %v926_v11 = vsel %vm263_vm0, %v882_v51, %v898_v44  ;;  %v980_v17 = vsel %vm349_vm2, %v977_v26, %v979_v6 }
 0x128   : > { %v765_v4 = vpop.permute.xlu0 %764  ;;  %v2882_v56 = vsel %vm475_vm4, %v785_v3, %v767_v31  ;;  %v946_v3 = vrot.slane %v897_v39, 1  ;;  %v948_v31 = vrot.slane %v929_v45, 1  ;;  %v950_v1 = vrot.slane %v926_v11, 1 }
 0x129   : > { %3842 = vst [vmem:[#allocation15_spill] sm:$0xff] %v2882_v56  ;;  %814 = vrot.lane.b32.xlu1 %v2882_v56, %s2364_s20  ;;  %v2887_v48 = vsel %vm475_vm4, %v784_v5, %v765_v4  ;;  %v945_v5 = vrot.slane %v925_v42, 1  ;;  %v930_v4 = vsel %vm263_vm0, %v899_v8, %v918_v13  ;;  %v903_v52 = vsel %vm263_vm0, %v901_v47, %v902_v12 }
 0x12a   : > { %3843 = vst [vmem:[#allocation16_spill] sm:$0xff] %v2887_v48  ;;  %812 = vrot.lane.b32.xlu0 %v2887_v48, %s2364_s20  ;;  %v949_v0 = vsel %vm312_vm1, %v946_v3, %v948_v31  ;;  %v953_v29 = vrot.slane %v930_v4, 1  ;;  %v931_v23 = vsel %vm263_vm0, %v902_v12, %v919_v18  ;;  %v1005_v30 = vadd.f32 %v980_v17, %v969_v60 }
 0x12b   : > { %v771_v20 = vpop.permute.xlu1 %770  ;;  %v947_v27 = vsel %vm312_vm1, %v945_v5, %v946_v3  ;;  %v927_v37 = vsel %vm263_vm0, %v883_v16, %v901_v47  ;;  %v971_v44 = vadd.f32 %v949_v0, %v897_v39  ;;  %v989_v13 = vrot.slane %v930_v4, 2 }
 0x12c   : > { %v769_v24 = vpop.permute.xlu0 %768  ;;  %v2901_v25 = vsel %vm475_vm4, %v787_v19, %v771_v20  ;;  %v982_v19 = vrot.slane %v897_v39, 2  ;;  %v984_v20 = vrot.slane %v929_v45, 2  ;;  %v970_v8 = vadd.f32 %v947_v27, %v925_v42 }
 0x12d   : > { %3844 = vst [vmem:[#allocation17_spill] sm:$0xff] %v2901_v25  ;;  %818 = vrot.lane.b32.xlu1 %v2901_v25, %s2364_s20  ;;  %v2906_v38 = vsel %vm475_vm4, %v786_v21, %v769_v24  ;;  %v978_v21 = vsel %vm349_vm2, %v976_v59, %v977_v26  ;;  %v981_v24 = vrot.slane %v925_v42, 2  ;;  %v987_v45 = vrot.slane %v900_v46, 2 }
 0x12e   : > { %3845 = vst [vmem:[#allocation18_spill] sm:$0xff] %v2906_v38  ;;  %816 = vrot.lane.b32.xlu0 %v2906_v38, %s2364_s20  ;;  %v1004_v32 = vadd.f32 %v978_v21, %v968_v61  ;;  %v985_v36 = vsel %vm349_vm2, %v982_v19, %v984_v20  ;;  %v954_v50 = vsel %vm312_vm1, %v951_v28, %v953_v29  ;;  %v956_v26 = vrot.slane %v903_v52, 1 }
 0x12f   : > { %v983_v49 = vsel %vm349_vm2, %v981_v24, %v982_v19  ;;  %v958_v51 = vrot.slane %v931_v23, 1  ;;  %v952_v60 = vsel %vm312_vm1, %v950_v1, %v951_v28  ;;  %v986_v6 = vrot.slane %v926_v11, 2 }
 0x130   : > { %v955_v61 = vrot.slane %v927_v37, 1  ;;  %v1007_v59 = vadd.f32 %v985_v36, %v971_v44  ;;  %v1006_v39 = vadd.f32 %v983_v49, %v970_v8  ;;  %v973_v42 = vadd.f32 %v954_v50, %v900_v46 }
 0x131   : > { %838 = vrot.lane.b32.xlu1 %v2854_v43, %s2367_s17  ;;  %v990_v3 = vsel %vm349_vm2, %v987_v45, %v989_v13  ;;  %v972_v31 = vadd.f32 %v952_v60, %v926_v11  ;;  %v959_v5 = vsel %vm312_vm1, %v956_v26, %v958_v51  ;;  %v992_v4 = vrot.slane %v903_v52, 2 }
 0x132   : > { %836 = vrot.lane.b32.xlu0 %v2859_v22, %s2367_s17  ;;  %v994_v47 = vrot.slane %v931_v23, 2  ;;  %v988_v12 = vsel %vm349_vm2, %v986_v6, %v987_v45  ;;  %v957_v18 = vsel %vm312_vm1, %v955_v61, %v956_v26  ;;  %v991_v19 = vrot.slane %v927_v37, 2 }
 0x133   : > { %v1009_v20 = vadd.f32 %v990_v3, %v973_v42  ;;  %v975_v16 = vadd.f32 %v959_v5, %v903_v52  ;;  %v1008_v46 = vadd.f32 %v988_v12, %v972_v31  ;;  %v974_v21 = vadd.f32 %v957_v18, %v927_v37 }
 0x134   : > { %v995_v17 = vsel %vm349_vm2, %v992_v4, %v994_v47  ;;  %v993_v11 = vsel %vm349_vm2, %v991_v19, %v992_v4 }
 0x135   : > { %842 = vrot.lane.b32.xlu1 %v2870_v55, %s2367_s17  ;;  %v1011_v24 = vadd.f32 %v995_v17, %v975_v16  ;;  %v1010_v0 = vadd.f32 %v993_v11, %v974_v21 }
 0x136   : > { %840 = vrot.lane.b32.xlu0 %v2875_v2, %s2367_s17 }
 0x139   : > { %846 = vrot.lane.b32.xlu1 %v2882_v56, %s2367_s17  ;;  %v231_v56 = vmul.f32 %v2670_v34, %v2670_v34 }
 0x13a   : > { %844 = vrot.lane.b32.xlu0 %v2887_v48, %s2367_s17 }
 0x13b   : > { %v1220_v34 = vrot.slane %v231_v56, 7 }
 0x13d   : > { %850 = vrot.lane.b32.xlu1 %v2901_v25, %s2367_s17 }
 0x13e   : > { %848 = vrot.lane.b32.xlu0 %v2906_v38, %s2367_s17 }
 0x141   : > { %1022 = vrot.lane.b32.xlu1 %v1005_v30, %s2364_s20 }
 0x142   : > { %1020 = vrot.lane.b32.xlu0 %v1004_v32, %s2364_s20 }
 0x145   : > { %1026 = vrot.lane.b32.xlu1 %v1007_v59, %s2364_s20 }
 0x146   : > { %1024 = vrot.lane.b32.xlu0 %v1006_v39, %s2364_s20 }
 0x149   : > { %1030 = vrot.lane.b32.xlu1 %v1009_v20, %s2364_s20 }
 0x14a   : > { %1028 = vrot.lane.b32.xlu0 %v1008_v46, %s2364_s20 }
 0x14d   : > { %1034 = vrot.lane.b32.xlu1 %v1011_v24, %s2364_s20 }
 0x14e   : > { %1032 = vrot.lane.b32.xlu0 %v1010_v0, %s2364_s20 }
 0x151   : > { %1046 = vrot.lane.b32.xlu1 %v1005_v30, %s2365_s6 }
 0x152   : > { %1044 = vrot.lane.b32.xlu0 %v1004_v32, %s2365_s6 }
 0x155   : > { %1050 = vrot.lane.b32.xlu1 %v1007_v59, %s2365_s6 }
 0x156   : > { %1048 = vrot.lane.b32.xlu0 %v1006_v39, %s2365_s6 }
 0x159   : > { %1054 = vrot.lane.b32.xlu1 %v1009_v20, %s2365_s6 }
 0x15a   : > { %1052 = vrot.lane.b32.xlu0 %v1008_v46, %s2365_s6 }
 0x15d   : > { %1058 = vrot.lane.b32.xlu1 %v1011_v24, %s2365_s6 }
 0x15e   : > { %1056 = vrot.lane.b32.xlu0 %v1010_v0, %s2365_s6 }
 0x161   : > { %1070 = vrot.lane.b32.xlu1 %v1005_v30, %s2366_s14 }
 0x162   : > { %1068 = vrot.lane.b32.xlu0 %v1004_v32, %s2366_s14 }
 0x163   : > { %v2977_v27 = vpop.permute.xlu1 %494 }
 0x164   : > { %v2980_v28 = vpop.permute.xlu0 %492 }
 0x165   : > { %1074 = vrot.lane.b32.xlu1 %v1007_v59, %s2366_s14 }
 0x166   : > { %1072 = vrot.lane.b32.xlu0 %v1006_v39, %s2366_s14 }
 0x167   : > { %v2985_v29 = vpop.permute.xlu1 %498 }
 0x168   : > { %v2987_v1 = vpop.permute.xlu0 %496 }
 0x169   : > { %1078 = vrot.lane.b32.xlu1 %v1009_v20, %s2366_s14 }
 0x16a   : > { %1076 = vrot.lane.b32.xlu0 %v1008_v46, %s2366_s14 }
 0x16b   : > { %v2991_v52 = vpop.permute.xlu1 %502 }
 0x16c   : > { %v2993_v23 = vpop.permute.xlu0 %500 }
 0x16d   : > { %1082 = vrot.lane.b32.xlu1 %v1011_v24, %s2366_s14 }
 0x16e   : > { %1080 = vrot.lane.b32.xlu0 %v1010_v0, %s2366_s14 }
 0x16f   : > { %v2995_v30 = vpop.permute.xlu1 %506 }
 0x170   : > { %v2997_v32 = vpop.permute.xlu0 %504 }
 0x173   : > { %v2999_v36 = vpop.permute.xlu1 %526 }
 0x174   : > { %v3001_v37 = vpop.permute.xlu0 %524 }
 0x177   : > { %v3003_v44 = vpop.permute.xlu1 %530 }
 0x178   : > { %v3005_v8 = vpop.permute.xlu0 %528 }
 0x17b   : > { %v3007_v45 = vpop.permute.xlu1 %534 }
 0x17c   : > { %v3009_v13 = vpop.permute.xlu0 %532 }
 0x17d   : > { %3846 = vst [vmem:[#allocation19_spill] sm:$0xff] %v3009_v13 }
 0x17f   : > { %v3011_v49 = vpop.permute.xlu1 %538 }
 0x180   : > { %3847 = vst [vmem:[#allocation20_spill] sm:$0xff] %v3011_v49  ;;  %v3013_v50 = vpop.permute.xlu0 %536 }
 0x181   : > { %3848 = vst [vmem:[#allocation21_spill] sm:$0xff] %v3013_v50 }
 0x193   : > { %v3015_v26 = vpop.permute.xlu1 %806 }
 0x194   : > { %3849 = vst [vmem:[#allocation22_spill] sm:$0xff] %v3015_v26  ;;  %v3017_v51 = vpop.permute.xlu0 %804  ;;  %v2233_v26 = vld [vmem:[%s2557_s5 + $0x38] sm:$0xff] }
 0x195   : > { %3850 = vst [vmem:[#allocation23_spill] sm:$0xff] %v3017_v51 }
 0x197   : > { %v3019_v60 = vpop.permute.xlu1 %810 }
 0x198   : > { %3851 = vst [vmem:[#allocation24_spill] sm:$0xff] %v3019_v60  ;;  %v3021_v6 = vpop.permute.xlu0 %808 }
 0x199   : > { %3852 = vst [vmem:[#allocation25_spill] sm:$0xff] %v3021_v6  ;;  %v232_v6 = vmul.f32 %v2673_v35, %v2673_v35 }
 0x19b   : > { %v3023_v61 = vpop.permute.xlu1 %814  ;;  %v1221_v35 = vrot.slane %v232_v6, 7 }
 0x19c   : > { %3853 = vst [vmem:[#allocation26_spill] sm:$0xff] %v3023_v61  ;;  %v3025_v59 = vpop.permute.xlu0 %812 }
 0x19d   : > { %3854 = vst [vmem:[#allocation27_spill] sm:$0xff] %v3025_v59 }
 0x19f   : > { %v3027_v39 = vpop.permute.xlu1 %818 }
 0x1a0   : > { %3855 = vst [vmem:[#allocation28_spill] sm:$0xff] %v3027_v39  ;;  %v3029_v42 = vpop.permute.xlu0 %816 }
 0x1a1   : > { %3856 = vst [vmem:[#allocation29_spill] sm:$0xff] %v3029_v42 }
 0x1a3   : > { %v3031_v3 = vpop.permute.xlu1 %838 }
 0x1a4   : > { %3857 = vst [vmem:[#allocation30_spill] sm:$0xff] %v3031_v3  ;;  %v3033_v31 = vpop.permute.xlu0 %836 }
 0x1a5   : > { %3858 = vst [vmem:[#allocation31_spill] sm:$0xff] %v3033_v31 }
 0x1a7   : > { %v3035_v5 = vpop.permute.xlu1 %842 }
 0x1a8   : > { %3859 = vst [vmem:[#allocation32_spill] sm:$0xff] %v3035_v5  ;;  %v3037_v4 = vpop.permute.xlu0 %840 }
 0x1a9   : > { %3860 = vst [vmem:[#allocation33_spill] sm:$0xff] %v3037_v4 }
 0x1ab   : > { %v3039_v47 = vpop.permute.xlu1 %846 }
 0x1ac   : > { %3861 = vst [vmem:[#allocation34_spill] sm:$0xff] %v3039_v47  ;;  %v3041_v12 = vpop.permute.xlu0 %844 }
 0x1ad   : > { %3862 = vst [vmem:[#allocation35_spill] sm:$0xff] %v3041_v12 }
 0x1af   : > { %v3043_v18 = vpop.permute.xlu1 %850 }
 0x1b0   : > { %3863 = vst [vmem:[#allocation36_spill] sm:$0xff] %v3043_v18  ;;  %v3045_v19 = vpop.permute.xlu0 %848 }
 0x1b1   : > { %3864 = vst [vmem:[#allocation37_spill] sm:$0xff] %v3045_v19 }
 0x1b3   : > { %v1023_v20 = vpop.permute.xlu1 %1022 }
 0x1b4   : > { %v1021_v16 = vpop.permute.xlu0 %1020 }
 0x1b7   : > { %v1027_v46 = vpop.permute.xlu1 %1026 }
 0x1b8   : > { %v1025_v17 = vpop.permute.xlu0 %1024 }
 0x1bb   : > { %v1031_v21 = vpop.permute.xlu1 %1030 }
 0x1bc   : > { %v1029_v11 = vpop.permute.xlu0 %1028 }
 0x1bf   : > { %v1035_v24 = vpop.permute.xlu1 %1034 }
 0x1c0   : > { %v1033_v0 = vpop.permute.xlu0 %1032 }
 0x1c3   : > { %v1047_v42 = vpop.permute.xlu1 %1046 }
 0x1c4   : > { %v1045_v38 = vpop.permute.xlu0 %1044  ;;  %v1093_v18 = vsel %vm466_vm3, %v1023_v20, %v1047_v42  ;;  %v1244_v20 = vrot.slane %v232_v6, 5 }
 0x1c5   : > { %v1092_v19 = vsel %vm466_vm3, %v1021_v16, %v1045_v38 }
 0x1c6   : > { %v1256_v6 = vsel %vm263_vm0, %v1221_v35, %v1244_v20 }
 0x1c7   : > { %v1051_v5 = vpop.permute.xlu1 %1050  ;;  %v1307_v2 = vrot.slane %v1256_v6, 2 }
 0x1c8   : > { %v1049_v4 = vpop.permute.xlu0 %1048  ;;  %v1095_v38 = vsel %vm466_vm3, %v1027_v46, %v1051_v5  ;;  %v1208_v5 = vrot.slane %v231_v56, 1  ;;  %v233_v56 = vmul.f32 %v2685_v40, %v2685_v40 }
 0x1c9   : > { %v1094_v42 = vsel %vm466_vm3, %v1025_v17, %v1049_v4 }
 0x1ca   : > { %v1223_v20 = vrot.slane %v233_v56, 7 }
 0x1cb   : > { %v1055_v39 = vpop.permute.xlu1 %1054 }
 0x1cc   : > { %v1053_v47 = vpop.permute.xlu0 %1052  ;;  %v1097_v16 = vsel %vm466_vm3, %v1031_v21, %v1055_v39  ;;  %v1252_v39 = vsel %vm263_vm0, %v1208_v5, %v1220_v34 }
 0x1cd   : > { %v1096_v46 = vsel %vm466_vm3, %v1029_v11, %v1053_v47  ;;  %v234_v47 = vmul.f32 %v2688_v41, %v2688_v41 }
 0x1cf   : > { %v1059_v25 = vpop.permute.xlu1 %1058  ;;  %v1224_v41 = vrot.slane %v234_v47, 7 }
 0x1d0   : > { %v1057_v12 = vpop.permute.xlu0 %1056  ;;  %v1099_v21 = vsel %vm466_vm3, %v1035_v24, %v1059_v25  ;;  %v1245_v25 = vrot.slane %v234_v47, 5  ;;  %v236_v24 = vmul.f32 %v2706_v58, %v2706_v58 }
 0x1d2   : > { %v1257_v47 = vsel %vm263_vm0, %v1224_v41, %v1245_v25  ;;  %v1246_v58 = vrot.slane %v236_v24, 5 }
 0x1d3   : > { %v1071_v59 = vpop.permute.xlu1 %1070  ;;  %v1276_v25 = vrot.slane %v1257_v47, 1  ;;  %v1312_v51 = vrot.slane %v1257_v47, 2 }
 0x1d4   : > { %v3050_v48 = vsel %vm475_vm4, %v1093_v18, %v1071_v59  ;;  %v1069_v31 = vpop.permute.xlu0 %1068 }
 0x1d5   : > { %v3053_v61 = vsel %vm475_vm4, %v1092_v19, %v1069_v31  ;;  %1118 = vrot.lane.b32.xlu1 %v3050_v48, %s2364_s20 }
 0x1d6   : > { %1116 = vrot.lane.b32.xlu0 %v3053_v61, %s2364_s20 }
 0x1d7   : > { %v1075_v59 = vpop.permute.xlu1 %1074 }
 0x1d8   : > { %v3066_v31 = vsel %vm475_vm4, %v1095_v38, %v1075_v59  ;;  %v1073_v18 = vpop.permute.xlu0 %1072 }
 0x1d9   : > { %v3069_v19 = vsel %vm475_vm4, %v1094_v42, %v1073_v18  ;;  %1122 = vrot.lane.b32.xlu1 %v3066_v31, %s2364_s20  ;;  %v1222_v42 = vsel %vm263_vm0, %v1220_v34, %v1221_v35  ;;  %v1098_v18 = vsel %vm466_vm3, %v1033_v0, %v1057_v12  ;;  %v1271_v34 = vrot.slane %v1256_v6, 1 }
 0x1da   : > { %1120 = vrot.lane.b32.xlu0 %v3069_v19, %s2364_s20  ;;  %v1269_v40 = vrot.slane %v1222_v42, 1  ;;  %v1268_v35 = vrot.slane %v1252_v39, 1  ;;  %v235_v12 = vmul.f32 %v2703_v57, %v2703_v57  ;;  %v1209_v0 = vrot.slane %v233_v56, 1 }
 0x1db   : > { %v1079_v4 = vpop.permute.xlu1 %1078  ;;  %v1227_v57 = vrot.slane %v236_v24, 7  ;;  %v237_v56 = vmul.f32 %v2721_v9, %v2721_v9 }
 0x1dc   : > { %v3078_v17 = vsel %vm475_vm4, %v1097_v16, %v1079_v4  ;;  %v1077_v38 = vpop.permute.xlu0 %1076  ;;  %v1272_v5 = vsel %vm312_vm1, %v1269_v40, %v1271_v34  ;;  %v1305_v34 = vrot.slane %v1222_v42, 2 }
 0x1dd   : > { %v3081_v59 = vsel %vm475_vm4, %v1096_v46, %v1077_v38  ;;  %1126 = vrot.lane.b32.xlu1 %v3078_v17, %s2364_s20  ;;  %v1270_v38 = vsel %vm312_vm1, %v1268_v35, %v1269_v40  ;;  %v1210_v40 = vrot.slane %v235_v12, 1  ;;  %v1297_v35 = vadd.f32 %v1272_v5, %v1222_v42 }
 0x1de   : > { %1124 = vrot.lane.b32.xlu0 %v3081_v59, %s2364_s20  ;;  %v1296_v3 = vadd.f32 %v1270_v38, %v1252_v39  ;;  %v1211_v6 = vrot.slane %v237_v56, 1 }
 0x1df   : > { %v1083_v11 = vpop.permute.xlu1 %1082 }
 0x1e0   : > { %v3097_v16 = vsel %vm475_vm4, %v1099_v21, %v1083_v11  ;;  %v1081_v4 = vpop.permute.xlu0 %1080  ;;  %v1225_v21 = vsel %vm263_vm0, %v1223_v20, %v1224_v41  ;;  %v1226_v11 = vrot.slane %v235_v12, 7  ;;  %v1304_v41 = vrot.slane %v1252_v39, 2 }
 0x1e1   : > { %v3100_v46 = vsel %vm475_vm4, %v1098_v18, %v1081_v4  ;;  %1130 = vrot.lane.b32.xlu1 %v3097_v16, %s2364_s20  ;;  %v1253_v18 = vsel %vm263_vm0, %v1209_v0, %v1223_v20  ;;  %v238_v4 = vmul.f32 %v2724_v10, %v2724_v10  ;;  %v1274_v20 = vrot.slane %v1225_v21, 1 }
 0x1e2   : > { %1128 = vrot.lane.b32.xlu0 %v3100_v46, %s2364_s20  ;;  %v1273_v24 = vrot.slane %v1253_v18, 1  ;;  %v1228_v9 = vsel %vm263_vm0, %v1226_v11, %v1227_v57  ;;  %v1258_v0 = vsel %vm263_vm0, %v1227_v57, %v1246_v58  ;;  %v1229_v10 = vrot.slane %v237_v56, 7 }
 0x1e3   : > { %v1230_v60 = vrot.slane %v238_v4, 7  ;;  %v1247_v12 = vrot.slane %v238_v4, 5  ;;  %v1310_v55 = vrot.slane %v1225_v21, 2  ;;  %v1254_v42 = vsel %vm263_vm0, %v1210_v40, %v1226_v11 }
 0x1e4   : > { %v1308_v39 = vsel %vm349_vm2, %v1305_v34, %v1307_v2  ;;  %v1306_v5 = vsel %vm349_vm2, %v1304_v41, %v1305_v34  ;;  %v1309_v38 = vrot.slane %v1253_v18, 2  ;;  %v1277_v57 = vsel %vm312_vm1, %v1274_v20, %v1276_v25 }
 0x1e5   : > { %1150 = vrot.lane.b32.xlu1 %v3050_v48, %s2367_s17  ;;  %v1275_v58 = vsel %vm312_vm1, %v1273_v24, %v1274_v20  ;;  %v1279_v4 = vrot.slane %v1228_v9, 1  ;;  %v1281_v47 = vrot.slane %v1258_v0, 1  ;;  %v1278_v22 = vrot.slane %v1254_v42, 1 }
 0x1e6   : > { %1148 = vrot.lane.b32.xlu0 %v3053_v61, %s2367_s17  ;;  %v1231_v11 = vsel %vm263_vm0, %v1229_v10, %v1230_v60  ;;  %v1259_v56 = vsel %vm263_vm0, %v1230_v60, %v1247_v12  ;;  %v3140_v40 = vadd.f32 %v1308_v39, %v1297_v35  ;;  %v3142_v2 = vadd.f32 %v1306_v5, %v1296_v3 }
 0x1e7   : > { %v1313_v34 = vsel %vm349_vm2, %v1310_v55, %v1312_v51  ;;  %v1255_v41 = vsel %vm263_vm0, %v1211_v6, %v1229_v10  ;;  %v1299_v25 = vadd.f32 %v1277_v57, %v1225_v21  ;;  %v1298_v20 = vadd.f32 %v1275_v58, %v1253_v18 }
 0x1e8   : > { %v1315_v24 = vrot.slane %v1228_v9, 2  ;;  %v1317_v50 = vrot.slane %v1258_v0, 2  ;;  %v1311_v60 = vsel %vm349_vm2, %v1309_v38, %v1310_v55  ;;  %v1282_v35 = vsel %vm312_vm1, %v1279_v4, %v1281_v47 }
 0x1e9   : > { %1154 = vrot.lane.b32.xlu1 %v3066_v31, %s2367_s17  ;;  %v1284_v3 = vrot.slane %v1231_v11, 1  ;;  %v1286_v12 = vrot.slane %v1259_v56, 1  ;;  %v1280_v51 = vsel %vm312_vm1, %v1278_v22, %v1279_v4  ;;  %v1314_v39 = vrot.slane %v1254_v42, 2 }
 0x1ea   : > { %1152 = vrot.lane.b32.xlu0 %v3069_v19, %s2367_s17  ;;  %v1283_v10 = vrot.slane %v1255_v41, 1  ;;  %v3155_v21 = vadd.f32 %v1313_v34, %v1299_v25  ;;  %v3157_v18 = vadd.f32 %v1311_v60, %v1298_v20  ;;  %v1301_v0 = vadd.f32 %v1282_v35, %v1228_v9  ;;  %v2219_v20 = vld [vmem:[%s2557_s5] sm:$0xff]  ;;  %v2220_v60 = vld [vmem:[%s2549_s3 + $0x8] sm:$0xff] }
 0x1eb   : > { %v1318_v6 = vsel %vm349_vm2, %v1315_v24, %v1317_v50  ;;  %v1300_v55 = vadd.f32 %v1280_v51, %v1254_v42  ;;  %v1287_v5 = vsel %vm312_vm1, %v1284_v3, %v1286_v12  ;;  %v1320_v38 = vrot.slane %v1231_v11, 2  ;;  %v2221_v35 = vld [vmem:[%s2557_s5 + $0x8] sm:$0xff] }
 0x1ec   : > { %v1322_v22 = vrot.slane %v1259_v56, 2  ;;  %v1316_v57 = vsel %vm349_vm2, %v1314_v39, %v1315_v24  ;;  %v1285_v58 = vsel %vm312_vm1, %v1283_v10, %v1284_v3  ;;  %v1319_v4 = vrot.slane %v1255_v41, 2 }
 0x1ed   : > { %1158 = vrot.lane.b32.xlu1 %v3078_v17, %s2367_s17  ;;  %v3167_v9 = vadd.f32 %v1318_v6, %v1301_v0  ;;  %v1303_v50 = vadd.f32 %v1287_v5, %v1231_v11  ;;  %v3171_v42 = vadd.f32 %v1316_v57, %v1300_v55  ;;  %v1302_v56 = vadd.f32 %v1285_v58, %v1255_v41  ;;  %v2218_v41 = vld [vmem:[%s2549_s3] sm:$0xff]  ;;  %v2222_v0 = vld [vmem:[%s2549_s3 + $0x10] sm:$0xff]  ;;  %v2224_v57 = vld [vmem:[%s2549_s3 + $0x18] sm:$0xff] }
 0x1ee   : > { %1156 = vrot.lane.b32.xlu0 %v3081_v59, %s2367_s17  ;;  %v1323_v47 = vsel %vm349_vm2, %v1320_v38, %v1322_v22  ;;  %v1321_v34 = vsel %vm349_vm2, %v1319_v4, %v1320_v38  ;;  %v239_v24 = vmul.f32 %v2219_v20, %v2218_v41  ;;  %v240_v3 = vmul.f32 %v2221_v35, %v2220_v60  ;;  %v2223_v6 = vld [vmem:[%s2557_s5 + $0x10] sm:$0xff]  ;;  %v2225_v58 = vld [vmem:[%s2557_s5 + $0x18] sm:$0xff]  ;;  %v2227_v60 = vld [vmem:[%s2557_s5 + $0x20] sm:$0xff] }
 0x1ef   : > { %v3177_v25 = vadd.f32 %v1323_v47, %v1303_v50  ;;  %v3181_v11 = vadd.f32 %v1321_v34, %v1302_v56  ;;  %v241_v55 = vmul.f32 %v2223_v6, %v2222_v0  ;;  %v242_v4 = vmul.f32 %v2225_v58, %v2224_v57 }
 0x1f0   : > { %v1548_v12 = vrot.slane %v239_v24, 7  ;;  %v1549_v51 = vrot.slane %v240_v3, 7  ;;  %v1572_v39 = vrot.slane %v240_v3, 5  ;;  %v1536_v10 = vrot.slane %v239_v24, 1  ;;  %v2226_v24 = vld [vmem:[%s2549_s3 + $0x20] sm:$0xff]  ;;  %v2228_v3 = vld [vmem:[%s2549_s3 + $0x28] sm:$0xff] }
 0x1f1   : > { %1162 = vrot.lane.b32.xlu1 %v3097_v16, %s2367_s17  ;;  %v1551_v34 = vrot.slane %v241_v55, 7  ;;  %v1552_v41 = vrot.slane %v242_v4, 7  ;;  %v1573_v20 = vrot.slane %v242_v4, 5  ;;  %v243_v35 = vmul.f32 %v2227_v60, %v2226_v24 }
 0x1f2   : > { %1160 = vrot.lane.b32.xlu0 %v3100_v46, %s2367_s17  ;;  %v1550_v5 = vsel %vm263_vm0, %v1548_v12, %v1549_v51  ;;  %v1584_v38 = vsel %vm263_vm0, %v1549_v51, %v1572_v39  ;;  %v1580_v22 = vsel %vm263_vm0, %v1536_v10, %v1548_v12  ;;  %v2229_v12 = vld [vmem:[%s2557_s5 + $0x28] sm:$0xff]  ;;  %v1537_v39 = vrot.slane %v241_v55, 1  ;;  %v2230_v55 = vld [vmem:[%s2549_s3 + $0x30] sm:$0xff] }
 0x1f3   : > { %v1597_v50 = vrot.slane %v1550_v5, 1  ;;  %v1599_v47 = vrot.slane %v1584_v38, 1  ;;  %v1596_v56 = vrot.slane %v1580_v22, 1  ;;  %v244_v51 = vmul.f32 %v2229_v12, %v2228_v3  ;;  %v2231_v3 = vld [vmem:[%s2557_s5 + $0x30] sm:$0xff] }
 0x1f4   : > { %v1553_v6 = vsel %vm263_vm0, %v1551_v34, %v1552_v41  ;;  %v1585_v57 = vsel %vm263_vm0, %v1552_v41, %v1573_v20  ;;  %v1554_v58 = vrot.slane %v243_v35, 7  ;;  %v1581_v24 = vsel %vm263_vm0, %v1537_v39, %v1551_v34 }
 0x1f5   : > { %1350 = vrot.lane.b32.xlu1 %v3140_v40, %s2364_s20  ;;  %v1600_v10 = vsel %vm312_vm1, %v1597_v50, %v1599_v47  ;;  %v1598_v0 = vsel %vm312_vm1, %v1596_v56, %v1597_v50  ;;  %v1555_v4 = vrot.slane %v244_v51, 7  ;;  %v1574_v60 = vrot.slane %v244_v51, 5 }
 0x1f6   : > { %1348 = vrot.lane.b32.xlu0 %v3142_v2, %s2364_s20  ;;  %v245_v12 = vmul.f32 %v2231_v3, %v2230_v55  ;;  %v1633_v43 = vrot.slane %v1550_v5, 2  ;;  %v1538_v50 = vrot.slane %v243_v35, 1  ;;  %v1635_v56 = vrot.slane %v1584_v38, 2 }
 0x1f7   : > { %v1624_v49 = vadd.f32 %v1598_v0, %v1580_v22  ;;  %v1632_v41 = vrot.slane %v1580_v22, 2  ;;  %v1602_v34 = vrot.slane %v1553_v6, 1  ;;  %v1604_v20 = vrot.slane %v1585_v57, 1 }
 0x1f8   : > { %v1601_v51 = vrot.slane %v1581_v24, 1  ;;  %v1556_v39 = vsel %vm263_vm0, %v1554_v58, %v1555_v4  ;;  %v1586_v55 = vsel %vm263_vm0, %v1555_v4, %v1574_v60  ;;  %v1640_v13 = vrot.slane %v1585_v57, 2 }
 0x1f9   : > { %1354 = vrot.lane.b32.xlu1 %v3155_v21, %s2364_s20  ;;  %v1634_v38 = vsel %vm349_vm2, %v1632_v41, %v1633_v43  ;;  %v1637_v22 = vrot.slane %v1581_v24, 2  ;;  %v1607_v4 = vrot.slane %v1556_v39, 1  ;;  %v1609_v57 = vrot.slane %v1586_v55, 1 }
 0x1fa   : > { %1352 = vrot.lane.b32.xlu0 %v3157_v18, %s2364_s20  ;;  %v1603_v0 = vsel %vm312_vm1, %v1601_v51, %v1602_v34  ;;  %v1643_v41 = vrot.slane %v1556_v39, 2 }
 0x1fb   : > { %v1610_v51 = vsel %vm312_vm1, %v1607_v4, %v1609_v57 }
 0x1fd   : > { %1358 = vrot.lane.b32.xlu1 %v3167_v9, %s2364_s20 }
 0x1fe   : > { %1356 = vrot.lane.b32.xlu0 %v3171_v42, %s2364_s20 }
 0x201   : > { %1362 = vrot.lane.b32.xlu1 %v3177_v25, %s2364_s20 }
 0x202   : > { %1360 = vrot.lane.b32.xlu0 %v3181_v11, %s2364_s20 }
 0x205   : > { %1374 = vrot.lane.b32.xlu1 %v3140_v40, %s2365_s6 }
 0x206   : > { %1372 = vrot.lane.b32.xlu0 %v3142_v2, %s2365_s6 }
 0x209   : > { %1378 = vrot.lane.b32.xlu1 %v3155_v21, %s2365_s6 }
 0x20a   : > { %1376 = vrot.lane.b32.xlu0 %v3157_v18, %s2365_s6 }
 0x20d   : > { %1382 = vrot.lane.b32.xlu1 %v3167_v9, %s2365_s6 }
 0x20e   : > { %1380 = vrot.lane.b32.xlu0 %v3171_v42, %s2365_s6 }
 0x211   : > { %1386 = vrot.lane.b32.xlu1 %v3177_v25, %s2365_s6 }
 0x212   : > { %1384 = vrot.lane.b32.xlu0 %v3181_v11, %s2365_s6 }
 0x215   : > { %1398 = vrot.lane.b32.xlu1 %v3140_v40, %s2366_s14  ;;  %v2232_v40 = vld [vmem:[%s2549_s3 + $0x38] sm:$0xff] }
 0x216   : > { %1396 = vrot.lane.b32.xlu0 %v3142_v2, %s2366_s14  ;;  %v246_v47 = vmul.f32 %v2233_v26, %v2232_v40  ;;  %v1625_v2 = vadd.f32 %v1600_v10, %v1550_v5  ;;  %v1557_v26 = vrot.slane %v245_v12, 7  ;;  %v1638_v40 = vrot.slane %v1553_v6, 2 }
 0x217   : > { %v1539_v5 = vrot.slane %v245_v12, 1  ;;  %v1605_v10 = vsel %vm312_vm1, %v1602_v34, %v1604_v20  ;;  %v1645_v34 = vrot.slane %v1586_v55, 2 }
 0x218   : > { %v1558_v3 = vrot.slane %v246_v47, 7  ;;  %v1575_v35 = vrot.slane %v246_v47, 5  ;;  %v1660_v47 = vadd.f32 %v1634_v38, %v1624_v49  ;;  %v1639_v20 = vsel %vm349_vm2, %v1637_v22, %v1638_v40 }
 0x219   : > { %1402 = vrot.lane.b32.xlu1 %v3155_v21, %s2366_s14  ;;  %v1582_v21 = vsel %vm263_vm0, %v1538_v50, %v1554_v58  ;;  %v1641_v50 = vsel %vm349_vm2, %v1638_v40, %v1640_v13  ;;  %v1646_v55 = vsel %vm349_vm2, %v1643_v41, %v1645_v34 }
 0x21a   : > { %1400 = vrot.lane.b32.xlu0 %v3157_v18, %s2366_s14  ;;  %v1636_v18 = vsel %vm349_vm2, %v1633_v43, %v1635_v56  ;;  %v1606_v60 = vrot.slane %v1582_v21, 1  ;;  %v1559_v58 = vsel %vm263_vm0, %v1557_v26, %v1558_v3  ;;  %v1587_v12 = vsel %vm263_vm0, %v1558_v3, %v1575_v35 }
 0x21b   : > { %v1583_v43 = vsel %vm263_vm0, %v1539_v5, %v1557_v26  ;;  %v1626_v56 = vadd.f32 %v1603_v0, %v1581_v24  ;;  %v1614_v49 = vrot.slane %v1587_v12, 1  ;;  %v1642_v3 = vrot.slane %v1582_v21, 2 }
 0x21c   : > { %v1608_v13 = vsel %vm312_vm1, %v1606_v60, %v1607_v4  ;;  %v1611_v26 = vrot.slane %v1583_v43, 1  ;;  %v1629_v24 = vadd.f32 %v1610_v51, %v1556_v39  ;;  %v1648_v40 = vrot.slane %v1559_v58, 2 }
 0x21d   : > { %1406 = vrot.lane.b32.xlu1 %v3167_v9, %s2366_s14  ;;  %v1661_v9 = vadd.f32 %v1636_v18, %v1625_v2  ;;  %v1612_v2 = vrot.slane %v1559_v58, 1  ;;  %v1650_v5 = vrot.slane %v1587_v12, 2  ;;  %v1644_v18 = vsel %vm349_vm2, %v1642_v3, %v1643_v41 }
 0x21e   : > { %1404 = vrot.lane.b32.xlu0 %v3171_v42, %s2366_s14  ;;  %v1627_v42 = vadd.f32 %v1605_v10, %v1553_v6  ;;  %v1662_v6 = vadd.f32 %v1639_v20, %v1626_v56  ;;  %v1647_v22 = vrot.slane %v1583_v43, 2  ;;  %v1665_v10 = vadd.f32 %v1646_v55, %v1629_v24 }
 0x21f   : > { %v1615_v35 = vsel %vm312_vm1, %v1612_v2, %v1614_v49  ;;  %v1613_v38 = vsel %vm312_vm1, %v1611_v26, %v1612_v2  ;;  %v1651_v4 = vsel %vm349_vm2, %v1648_v40, %v1650_v5 }
 0x220   : > { %v1631_v0 = vadd.f32 %v1615_v35, %v1559_v58  ;;  %v1630_v57 = vadd.f32 %v1613_v38, %v1583_v43 }
 0x221   : > { %1410 = vrot.lane.b32.xlu1 %v3177_v25, %s2366_s14  ;;  %v1663_v25 = vadd.f32 %v1641_v50, %v1627_v42 }
 0x222   : > { %1408 = vrot.lane.b32.xlu0 %v3181_v11, %s2366_s14  ;;  %v1628_v11 = vadd.f32 %v1608_v13, %v1582_v21  ;;  %v1649_v21 = vsel %vm349_vm2, %v1647_v22, %v1648_v40  ;;  %v1667_v60 = vadd.f32 %v1651_v4, %v1631_v0 }
 0x223   : > { %v1666_v12 = vadd.f32 %v1649_v21, %v1630_v57 }
 0x224   : > { %v1664_v39 = vadd.f32 %v1644_v18, %v1628_v11 }
 0x225   : > { %1678 = vrot.lane.b32.xlu1 %v1661_v9, %s2364_s20 }
 0x226   : > { %1676 = vrot.lane.b32.xlu0 %v1660_v47, %s2364_s20 }
 0x229   : > { %1682 = vrot.lane.b32.xlu1 %v1663_v25, %s2364_s20 }
 0x22a   : > { %1680 = vrot.lane.b32.xlu0 %v1662_v6, %s2364_s20 }
 0x22d   : > { %1686 = vrot.lane.b32.xlu1 %v1665_v10, %s2364_s20 }
 0x22e   : > { %1684 = vrot.lane.b32.xlu0 %v1664_v39, %s2364_s20 }
 0x231   : > { %1690 = vrot.lane.b32.xlu1 %v1667_v60, %s2364_s20 }
 0x232   : > { %1688 = vrot.lane.b32.xlu0 %v1666_v12, %s2364_s20 }
 0x235   : > { %1702 = vrot.lane.b32.xlu1 %v1661_v9, %s2365_s6 }
 0x236   : > { %1700 = vrot.lane.b32.xlu0 %v1660_v47, %s2365_s6 }
 0x239   : > { %1706 = vrot.lane.b32.xlu1 %v1663_v25, %s2365_s6 }
 0x23a   : > { %1704 = vrot.lane.b32.xlu0 %v1662_v6, %s2365_s6 }
 0x23d   : > { %1710 = vrot.lane.b32.xlu1 %v1665_v10, %s2365_s6 }
 0x23e   : > { %1708 = vrot.lane.b32.xlu0 %v1664_v39, %s2365_s6 }
 0x241   : > { %1714 = vrot.lane.b32.xlu1 %v1667_v60, %s2365_s6 }
 0x242   : > { %1712 = vrot.lane.b32.xlu0 %v1666_v12, %s2365_s6 }
 0x245   : > { %1726 = vrot.lane.b32.xlu1 %v1661_v9, %s2366_s14 }
 0x246   : > { %1724 = vrot.lane.b32.xlu0 %v1660_v47, %s2366_s14 }
 0x247   : > { %v1119_v58 = vpop.permute.xlu1 %1118 }
 0x248   : > { %v1117_v50 = vpop.permute.xlu0 %1116  ;;  %v1141_v34 = vadd.f32 %v1119_v58, %v3050_v48 }
 0x249   : > { %1730 = vrot.lane.b32.xlu1 %v1663_v25, %s2366_s14  ;;  %v1140_v20 = vadd.f32 %v1117_v50, %v3053_v61 }
 0x24a   : > { %1728 = vrot.lane.b32.xlu0 %v1662_v6, %s2366_s14 }
 0x24b   : > { %v1123_v43 = vpop.permute.xlu1 %1122 }
 0x24c   : > { %v1121_v42 = vpop.permute.xlu0 %1120  ;;  %v1143_v3 = vadd.f32 %v1123_v43, %v3066_v31 }
 0x24d   : > { %1734 = vrot.lane.b32.xlu1 %v1665_v10, %s2366_s14  ;;  %v1142_v26 = vadd.f32 %v1121_v42, %v3069_v19 }
 0x24e   : > { %1732 = vrot.lane.b32.xlu0 %v1664_v39, %s2366_s14 }
 0x24f   : > { %v1127_v56 = vpop.permute.xlu1 %1126 }
 0x250   : > { %v1125_v41 = vpop.permute.xlu0 %1124  ;;  %v1145_v48 = vadd.f32 %v1127_v56, %v3078_v17 }
 0x251   : > { %1738 = vrot.lane.b32.xlu1 %v1667_v60, %s2366_s14  ;;  %v1144_v61 = vadd.f32 %v1125_v41, %v3081_v59 }
 0x252   : > { %1736 = vrot.lane.b32.xlu0 %v1666_v12, %s2366_s14 }
 0x253   : > { %v1131_v9 = vpop.permute.xlu1 %1130 }
 0x254   : > { %v1129_v47 = vpop.permute.xlu0 %1128  ;;  %v1147_v31 = vadd.f32 %v1131_v9, %v3097_v16 }
 0x255   : > { %v1146_v19 = vadd.f32 %v1129_v47, %v3100_v46 }
 0x257   : > { %v1151_v51 = vpop.permute.xlu1 %1150 }
 0x258   : > { %v3289_v2 = vadd.f32 %v1151_v51, %v1141_v34  ;;  %v1149_v49 = vpop.permute.xlu0 %1148 }
 0x259   : > { %v3291_v13 = vadd.f32 %v1149_v49, %v1140_v20 }
 0x25b   : > { %v1155_v25 = vpop.permute.xlu1 %1154 }
 0x25c   : > { %v3295_v6 = vadd.f32 %v1155_v25, %v1143_v3  ;;  %v1153_v24 = vpop.permute.xlu0 %1152 }
 0x25d   : > { %v3297_v55 = vadd.f32 %v1153_v24, %v1142_v26 }
 0x25f   : > { %v1159_v11 = vpop.permute.xlu1 %1158 }
 0x260   : > { %v3301_v35 = vadd.f32 %v1159_v11, %v1145_v48  ;;  %v1157_v40 = vpop.permute.xlu0 %1156 }
 0x261   : > { %v3303_v5 = vadd.f32 %v1157_v40, %v1144_v61 }
 0x263   : > { %v1163_v18 = vpop.permute.xlu1 %1162 }
 0x264   : > { %v3307_v38 = vadd.f32 %v1163_v18, %v1147_v31  ;;  %v1161_v22 = vpop.permute.xlu0 %1160 }
 0x265   : > { %v3309_v10 = vadd.f32 %v1161_v22, %v1146_v19 }
 0x267   : > { %v1351_v0 = vpop.permute.xlu1 %1350 }
 0x268   : > { %v1349_v17 = vpop.permute.xlu0 %1348 }
 0x26b   : > { %v1355_v39 = vpop.permute.xlu1 %1354 }
 0x26c   : > { %v1353_v59 = vpop.permute.xlu0 %1352 }
 0x26f   : > { %v1359_v4 = vpop.permute.xlu1 %1358 }
 0x270   : > { %v1357_v57 = vpop.permute.xlu0 %1356 }
 0x273   : > { %v1363_v21 = vpop.permute.xlu1 %1362 }
 0x274   : > { %v1361_v60 = vpop.permute.xlu0 %1360 }
 0x277   : > { %v1375_v12 = vpop.permute.xlu1 %1374 }
 0x278   : > { %v1373_v58 = vpop.permute.xlu0 %1372  ;;  %v1421_v41 = vsel %vm466_vm3, %v1351_v0, %v1375_v12 }
 0x279   : > { %v1420_v47 = vsel %vm466_vm3, %v1349_v17, %v1373_v58 }
 0x27b   : > { %v1379_v50 = vpop.permute.xlu1 %1378 }
 0x27c   : > { %v1377_v16 = vpop.permute.xlu0 %1376  ;;  %v1423_v49 = vsel %vm466_vm3, %v1355_v39, %v1379_v50 }
 0x27d   : > { %v1422_v26 = vsel %vm466_vm3, %v1353_v59, %v1377_v16 }
 0x27f   : > { %v1383_v43 = vpop.permute.xlu1 %1382 }
 0x280   : > { %v1381_v46 = vpop.permute.xlu0 %1380  ;;  %v1425_v61 = vsel %vm466_vm3, %v1359_v4, %v1383_v43 }
 0x281   : > { %v1424_v40 = vsel %vm466_vm3, %v1357_v57, %v1381_v46 }
 0x283   : > { %v1387_v42 = vpop.permute.xlu1 %1386 }
 0x284   : > { %v1385_v56 = vpop.permute.xlu0 %1384  ;;  %v1427_v22 = vsel %vm466_vm3, %v1363_v21, %v1387_v42 }
 0x285   : > { %v1426_v17 = vsel %vm466_vm3, %v1361_v60, %v1385_v56 }
 0x287   : > { %v1399_v9 = vpop.permute.xlu1 %1398 }
 0x288   : > { %v3314_v34 = vsel %vm475_vm4, %v1421_v41, %v1399_v9  ;;  %v1397_v20 = vpop.permute.xlu0 %1396 }
 0x289   : > { %v3317_v51 = vsel %vm475_vm4, %v1420_v47, %v1397_v20  ;;  %1446 = vrot.lane.b32.xlu1 %v3314_v34, %s2364_s20 }
 0x28a   : > { %1444 = vrot.lane.b32.xlu0 %v3317_v51, %s2364_s20 }
 0x28b   : > { %v1403_v3 = vpop.permute.xlu1 %1402 }
 0x28c   : > { %v3326_v25 = vsel %vm475_vm4, %v1423_v49, %v1403_v3  ;;  %v1401_v24 = vpop.permute.xlu0 %1400 }
 0x28d   : > { %v3329_v48 = vsel %vm475_vm4, %v1422_v26, %v1401_v24  ;;  %1450 = vrot.lane.b32.xlu1 %v3326_v25, %s2364_s20 }
 0x28e   : > { %1448 = vrot.lane.b32.xlu0 %v3329_v48, %s2364_s20 }
 0x28f   : > { %v1407_v11 = vpop.permute.xlu1 %1406 }
 0x290   : > { %v3338_v31 = vsel %vm475_vm4, %v1425_v61, %v1407_v11  ;;  %v1405_v19 = vpop.permute.xlu0 %1404 }
 0x291   : > { %v3341_v18 = vsel %vm475_vm4, %v1424_v40, %v1405_v19  ;;  %1454 = vrot.lane.b32.xlu1 %v3338_v31, %s2364_s20 }
 0x292   : > { %1452 = vrot.lane.b32.xlu0 %v3341_v18, %s2364_s20 }
 0x293   : > { %v1411_v0 = vpop.permute.xlu1 %1410 }
 0x294   : > { %v3350_v39 = vsel %vm475_vm4, %v1427_v22, %v1411_v0  ;;  %v1409_v59 = vpop.permute.xlu0 %1408 }
 0x295   : > { %v3353_v4 = vsel %vm475_vm4, %v1426_v17, %v1409_v59  ;;  %1458 = vrot.lane.b32.xlu1 %v3350_v39, %s2364_s20 }
 0x296   : > { %1456 = vrot.lane.b32.xlu0 %v3353_v4, %s2364_s20 }
 0x297   : > { %v1679_v57 = vpop.permute.xlu1 %1678 }
 0x298   : > { %v1677_v12 = vpop.permute.xlu0 %1676 }
 0x299   : > { %1478 = vrot.lane.b32.xlu1 %v3314_v34, %s2367_s17 }
 0x29a   : > { %1476 = vrot.lane.b32.xlu0 %v3317_v51, %s2367_s17 }
 0x29b   : > { %v1683_v21 = vpop.permute.xlu1 %1682 }
 0x29c   : > { %v1681_v60 = vpop.permute.xlu0 %1680 }
 0x29d   : > { %1482 = vrot.lane.b32.xlu1 %v3326_v25, %s2367_s17 }
 0x29e   : > { %1480 = vrot.lane.b32.xlu0 %v3329_v48, %s2367_s17 }
 0x29f   : > { %v1687_v58 = vpop.permute.xlu1 %1686 }
 0x2a0   : > { %v1685_v50 = vpop.permute.xlu0 %1684 }
 0x2a1   : > { %1486 = vrot.lane.b32.xlu1 %v3338_v31, %s2367_s17 }
 0x2a2   : > { %1484 = vrot.lane.b32.xlu0 %v3341_v18, %s2367_s17 }
 0x2a3   : > { %v1691_v16 = vpop.permute.xlu1 %1690 }
 0x2a4   : > { %v1689_v43 = vpop.permute.xlu0 %1688 }
 0x2a5   : > { %1490 = vrot.lane.b32.xlu1 %v3350_v39, %s2367_s17 }
 0x2a6   : > { %1488 = vrot.lane.b32.xlu0 %v3353_v4, %s2367_s17 }
 0x2a7   : > { %v1703_v46 = vpop.permute.xlu1 %1702 }
 0x2a8   : > { %v1701_v42 = vpop.permute.xlu0 %1700  ;;  %v1749_v3 = vsel %vm466_vm3, %v1679_v57, %v1703_v46 }
 0x2a9   : > { %v1748_v24 = vsel %vm466_vm3, %v1677_v12, %v1701_v42 }
 0x2ab   : > { %v1707_v56 = vpop.permute.xlu1 %1706 }
 0x2ac   : > { %v1705_v41 = vpop.permute.xlu0 %1704  ;;  %v1751_v19 = vsel %vm466_vm3, %v1683_v21, %v1707_v56 }
 0x2ad   : > { %v1750_v0 = vsel %vm466_vm3, %v1681_v60, %v1705_v41 }
 0x2af   : > { %v1711_v9 = vpop.permute.xlu1 %1710 }
 0x2b0   : > { %v1709_v47 = vpop.permute.xlu0 %1708  ;;  %v1753_v12 = vsel %vm466_vm3, %v1687_v58, %v1711_v9 }
 0x2b1   : > { %v1752_v21 = vsel %vm466_vm3, %v1685_v50, %v1709_v47 }
 0x2b3   : > { %v1715_v20 = vpop.permute.xlu1 %1714 }
 0x2b4   : > { %v1713_v49 = vpop.permute.xlu0 %1712  ;;  %v1755_v41 = vsel %vm466_vm3, %v1691_v16, %v1715_v20 }
 0x2b5   : > { %v1754_v58 = vsel %vm466_vm3, %v1689_v43, %v1713_v49 }
 0x2b7   : > { %v1727_v26 = vpop.permute.xlu1 %1726 }
 0x2b8   : > { %v3378_v61 = vsel %vm475_vm4, %v1749_v3, %v1727_v26  ;;  %v1725_v11 = vpop.permute.xlu0 %1724 }
 0x2b9   : > { %3865 = vst [vmem:[#allocation38_spill] sm:$0xff] %v3378_v61  ;;  %v3381_v40 = vsel %vm475_vm4, %v1748_v24, %v1725_v11  ;;  %1774 = vrot.lane.b32.xlu1 %v3378_v61, %s2364_s20  ;;  %v517_v24 = vadd.f32 %v2977_v27, %v2790_v53  ;;  %v521_v53 = vadd.f32 %v2991_v52, %v2814_v7  ;;  %v3875_v52 = vld [vmem:[#allocation19_spill] sm:$0xff] }
 0x2ba   : > { %3866 = vst [vmem:[#allocation39_spill] sm:$0xff] %v3381_v40  ;;  %1772 = vrot.lane.b32.xlu0 %v3381_v40, %s2364_s20  ;;  %v522_v7 = vadd.f32 %v2997_v32, %v2831_v15 }
 0x2bb   : > { %v1731_v22 = vpop.permute.xlu1 %1730 }
 0x2bc   : > { %v3390_v17 = vsel %vm475_vm4, %v1751_v19, %v1731_v22  ;;  %v1729_v59 = vpop.permute.xlu0 %1728  ;;  %v516_v19 = vadd.f32 %v2980_v28, %v2795_v54  ;;  %v519_v22 = vadd.f32 %v2985_v29, %v2802_v62  ;;  %v520_v62 = vadd.f32 %v2993_v23, %v2819_v33  ;;  %v3877_v23 = vld [vmem:[#allocation11_spill] sm:$0xff] }
 0x2bd   : > { %3867 = vst [vmem:[#allocation40_spill] sm:$0xff] %v3390_v17  ;;  %v3393_v57 = vsel %vm475_vm4, %v1750_v0, %v1729_v59  ;;  %1778 = vrot.lane.b32.xlu1 %v3390_v17, %s2364_s20  ;;  %v549_v0 = vadd.f32 %v2999_v36, %v517_v24  ;;  %v523_v36 = vadd.f32 %v2995_v30, %v2826_v14  ;;  %v3880_v14 = vld [vmem:[#allocation21_spill] sm:$0xff] }
 0x2be   : > { %3868 = vst [vmem:[#allocation41_spill] sm:$0xff] %v3393_v57  ;;  %1776 = vrot.lane.b32.xlu0 %v3393_v57, %s2364_s20  ;;  %v548_v59 = vadd.f32 %v3001_v37, %v516_v19  ;;  %v552_v37 = vadd.f32 %v3875_v52, %v520_v62  ;;  %v554_v30 = vadd.f32 %v3880_v14, %v522_v7  ;;  %v3890_v7 = vld [vmem:[#allocation15_spill] sm:$0xff] }
 0x2bf   : > { %v1735_v46 = vpop.permute.xlu1 %1734  ;;  %v3466_v27 = vmul.f32 0.11111111, %v549_v0  ;;  %v3885_v0 = vld [vmem:[#allocation24_spill] sm:$0xff] }
 0x2c0   : > { %v3402_v60 = vsel %vm475_vm4, %v1753_v12, %v1735_v46  ;;  %v1733_v42 = vpop.permute.xlu0 %1732  ;;  %v551_v12 = vadd.f32 %v3003_v44, %v519_v22  ;;  %v518_v46 = vadd.f32 %v2987_v1, %v2807_v63  ;;  %v3472_v28 = vmul.f32 0.11111111, %v548_v59  ;;  %v3884_v22 = vld [vmem:[#allocation13_spill] sm:$0xff] }
 0x2c1   : > { %3869 = vst [vmem:[#allocation42_spill] sm:$0xff] %v3402_v60  ;;  %v3405_v56 = vsel %vm475_vm4, %v1752_v21, %v1733_v42  ;;  %1782 = vrot.lane.b32.xlu1 %v3402_v60, %s2364_s20  ;;  %v553_v1 = vadd.f32 %v3007_v45, %v521_v53  ;;  %v1861_v44 = vmul.f32 2.0, %v3466_v27  ;;  %v3876_v42 = vld [vmem:[#allocation20_spill] sm:$0xff]  ;;  %v3882_v45 = vld [vmem:[#allocation23_spill] sm:$0xff]  ;;  %v831_v59 = vadd.f32 %v3885_v0, %v3884_v22 }
 0x2c2   : > { %3870 = vst [vmem:[#allocation43_spill] sm:$0xff] %v3405_v56  ;;  %1780 = vrot.lane.b32.xlu0 %v3405_v56, %s2364_s20  ;;  %3873 = vst [vmem:[#allocation46_spill] sm:$0xff] %v3472_v28  ;;  %v550_v29 = vadd.f32 %v3005_v8, %v518_v46  ;;  %v3477_v63 = vmul.f32 0.11111111, %v551_v12  ;;  %v555_v33 = vadd.f32 %v3876_v42, %v523_v36  ;;  %v1860_v8 = vmul.f32 2.0, %v3472_v28  ;;  %v3886_v12 = vld [vmem:[#allocation30_spill] sm:$0xff] }
 0x2c3   : > { %v1739_v3 = vpop.permute.xlu1 %1738  ;;  %v3494_v32 = vmul.f32 0.11111111, %v553_v1  ;;  %v3499_v62 = vmul.f32 0.11111111, %v552_v37  ;;  %v3889_v36 = vld [vmem:[#allocation25_spill] sm:$0xff]  ;;  %v3891_v42 = vld [vmem:[#allocation26_spill] sm:$0xff] }
 0x2c4   : > { %v3414_v50 = vsel %vm475_vm4, %v1755_v41, %v1739_v3  ;;  %v1737_v9 = vpop.permute.xlu0 %1736  ;;  %3874 = vst [vmem:[#allocation47_spill] sm:$0xff] %v3477_v63  ;;  %v3878_v41 = vld [vmem:[#allocation22_spill] sm:$0xff]  ;;  %v1863_v15 = vmul.f32 2.0, %v3477_v63  ;;  %v3894_v1 = vld [vmem:[#allocation16_spill] sm:$0xff]  ;;  %v3513_v37 = vmul.f32 0.11111111, %v554_v30 }
 0x2c5   : > { %3871 = vst [vmem:[#allocation44_spill] sm:$0xff] %v3414_v50  ;;  %v3417_v47 = vsel %vm475_vm4, %v1754_v58, %v1737_v9  ;;  %1786 = vrot.lane.b32.xlu1 %v3414_v50, %s2364_s20  ;;  %v829_v3 = vadd.f32 %v3878_v41, %v3877_v23  ;;  %v3488_v58 = vmul.f32 0.11111111, %v550_v29  ;;  %v3881_v9 = vld [vmem:[#allocation12_spill] sm:$0xff]  ;;  %3883 = vst [vmem:[#allocation20_spill] sm:$0xff] %v3494_v32  ;;  %v3888_v29 = vld [vmem:[#allocation14_spill] sm:$0xff] }
 0x2c6   : > { %3872 = vst [vmem:[#allocation45_spill] sm:$0xff] %v3417_v47  ;;  %1784 = vrot.lane.b32.xlu0 %v3417_v47, %s2364_s20  ;;  %v828_v24 = vadd.f32 %v3882_v45, %v3881_v9  ;;  %3887 = vst [vmem:[#allocation11_spill] sm:$0xff] %v3499_v62  ;;  %v830_v52 = vadd.f32 %v3889_v36, %v3888_v29  ;;  %v833_v23 = vadd.f32 %v3891_v42, %v3890_v7  ;;  %v3892_v41 = vld [vmem:[#allocation31_spill] sm:$0xff]  ;;  %v3897_v22 = vld [vmem:[#allocation28_spill] sm:$0xff] }
 0x2c7   : > { %3879 = vst [vmem:[#allocation19_spill] sm:$0xff] %v3488_v58  ;;  %v861_v46 = vadd.f32 %v3886_v12, %v829_v3  ;;  %v3506_v9 = vmul.f32 0.11111111, %v555_v33  ;;  %v3895_v45 = vld [vmem:[#allocation27_spill] sm:$0xff]  ;;  %v3898_v3 = vld [vmem:[#allocation32_spill] sm:$0xff]  ;;  %3899 = vst [vmem:[#allocation21_spill] sm:$0xff] %v3513_v37 }
 0x2c8   : > { %v860_v14 = vadd.f32 %v3892_v41, %v828_v24  ;;  %v863_v12 = vadd.f32 %v3898_v3, %v831_v59  ;;  %v3902_v36 = vld [vmem:[#allocation33_spill] sm:$0xff]  ;;  %v3903_v7 = vld [vmem:[#allocation34_spill] sm:$0xff]  ;;  %v1862_v33 = vmul.f32 2.0, %v3488_v58  ;;  %v3904_v41 = vld [vmem:[#allocation35_spill] sm:$0xff]  ;;  %v1864_v30 = vmul.f32 2.0, %v3499_v62 }
 0x2c9   : > { %1806 = vrot.lane.b32.xlu1 %v3378_v61, %s2367_s17  ;;  %3893 = vst [vmem:[#allocation22_spill] sm:$0xff] %v3506_v9  ;;  %v865_v42 = vadd.f32 %v3903_v7, %v833_v23  ;;  %v3520_v24 = vmul.f32 0.11111111, %v861_v46  ;;  %v3534_v46 = vmul.f32 %v3466_v27, %v3466_v27  ;;  %v1866_v3 = vmul.f32 2.0, %v3513_v37 }
 0x2ca   : > { %1804 = vrot.lane.b32.xlu0 %v3381_v40, %s2367_s17  ;;  %v3526_v59 = vmul.f32 0.11111111, %v860_v14  ;;  %v3530_v23 = vmul.f32 0.11111111, %v863_v12  ;;  %v3584_v61 = vmul.f32 %v3513_v37, %v3513_v37 }
 0x2cb   : > { %v1869_v12 = vmul.f32 %v1861_v44, %v3520_v24  ;;  %v3567_v40 = vmul.f32 %v3520_v24, %v3520_v24 }
 0x2cc   : > { %v1871_v44 = vmul.f32 %v1863_v15, %v3530_v23  ;;  %3907 = vst [vmem:[#allocation12_spill] sm:$0xff] %v3584_v61 }
 0x2cd   : > { %1810 = vrot.lane.b32.xlu1 %v3390_v17, %s2367_s17 }
 0x2ce   : > { %1808 = vrot.lane.b32.xlu0 %v3393_v57, %s2367_s17  ;;  %v862_v57 = vadd.f32 %v3902_v36, %v830_v52  ;;  %v1867_v52 = vmul.f32 2.0, %v3506_v9  ;;  %v3543_v36 = vmul.f32 0.11111111, %v865_v42  ;;  %v3563_v42 = vmul.f32 %v3494_v32, %v3494_v32 }
 0x2cf   : > { %v3597_v61 = vadd.f32 0.0001, %v1871_v44 }
 0x2d0   : > { %v3541_v14 = vmul.f32 0.11111111, %v862_v57 }
 0x2d1   : > { %1814 = vrot.lane.b32.xlu1 %v3402_v60, %s2367_s17  ;;  %v3901_v60 = vld [vmem:[#allocation29_spill] sm:$0xff] }
 0x2d2   : > { %1812 = vrot.lane.b32.xlu0 %v3405_v56, %s2367_s17  ;;  %v3900_v56 = vld [vmem:[#allocation18_spill] sm:$0xff] }
 0x2d3   : > { %v834_v29 = vadd.f32 %v3901_v60, %v3900_v56 }
 0x2d5   : > { %1818 = vrot.lane.b32.xlu1 %v3414_v50, %s2367_s17  ;;  %v3896_v50 = vld [vmem:[#allocation17_spill] sm:$0xff] }
 0x2d6   : > { %1816 = vrot.lane.b32.xlu0 %v3417_v47, %s2367_s17  ;;  %v832_v47 = vadd.f32 %v3895_v45, %v3894_v1  ;;  %v835_v0 = vadd.f32 %v3897_v22, %v3896_v50  ;;  %v3905_v45 = vld [vmem:[#allocation36_spill] sm:$0xff]  ;;  %v1865_v50 = vmul.f32 2.0, %v3494_v32  ;;  %v3906_v22 = vld [vmem:[#allocation37_spill] sm:$0xff] }
 0x2d7   : > { %v866_v60 = vadd.f32 %v3906_v22, %v834_v29  ;;  %v3547_v29 = vmul.f32 %v3477_v63, %v3477_v63  ;;  %v1868_v22 = vmul.f32 %v1860_v8, %v3526_v59 }
 0x2d8   : > { %v864_v1 = vadd.f32 %v3904_v41, %v832_v47  ;;  %v867_v17 = vadd.f32 %v3905_v45, %v835_v0  ;;  %v3538_v47 = vmul.f32 %v3472_v28, %v3472_v28  ;;  %v3556_v45 = vmul.f32 %v3488_v58, %v3488_v58 }
 0x2d9   : > { %v3559_v57 = vmul.f32 0.11111111, %v866_v60  ;;  %v1870_v60 = vmul.f32 %v1862_v33, %v3541_v14  ;;  %v1873_v32 = vmul.f32 %v1865_v50, %v3543_v36  ;;  %v3588_v58 = vadd.f32 0.0001, %v1869_v12 }
 0x2da   : > { %v3550_v7 = vmul.f32 0.11111111, %v864_v1  ;;  %v3552_v41 = vmul.f32 0.11111111, %v867_v17  ;;  %v3572_v17 = vmul.f32 %v3499_v62, %v3499_v62  ;;  %v3576_v1 = vmul.f32 %v3506_v9, %v3506_v9 }
 0x2db   : > { %v1874_v33 = vmul.f32 %v1866_v3, %v3559_v57  ;;  %v1909_v50 = vadd.f32 %v3567_v40, %v3534_v46 }
 0x2dc   : > { %v1872_v9 = vmul.f32 %v1864_v30, %v3550_v7  ;;  %v1875_v63 = vmul.f32 %v1867_v52, %v3552_v41  ;;  %v3605_v30 = vadd.f32 0.0001, %v1870_v60  ;;  %v3607_v52 = vadd.f32 0.0001, %v1873_v32 }
 0x2dd   : > { %v3617_v44 = vadd.f32 0.0001, %v1874_v33 }
 0x2de   : > { %3908 = vst [vmem:[#allocation23_spill] sm:$0xff] %v3607_v52  ;;  %v3613_v12 = vadd.f32 0.0001, %v1872_v9  ;;  %v1181_v52 = vmul.f32 0.11111111, %v3289_v2 }
 0x2df   : > { %3910 = vst [vmem:[#allocation24_spill] sm:$0xff] %v3617_v44 }
 0x2fb   : > { %v3439_v16 = vpop.permute.xlu1 %1446 }
 0x2fc   : > { %v3441_v43 = vpop.permute.xlu0 %1444  ;;  %v1469_v8 = vadd.f32 %v3439_v16, %v3314_v34  ;;  %v3592_v16 = vadd.f32 0.0001, %v1868_v22  ;;  %v3615_v22 = vadd.f32 0.0001, %v1875_v63 }
 0x2fd   : > { %v1468_v15 = vadd.f32 %v3441_v43, %v3317_v51  ;;  %v1516_v43 = vmul.f32 %v3526_v59, %v3526_v59 }
 0x2fe   : > { %3909 = vst [vmem:[#allocation13_spill] sm:$0xff] %v3615_v22  ;;  %v1520_v22 = vmul.f32 %v3550_v7, %v3550_v7 }
 0x2ff   : > { %v3443_v20 = vpop.permute.xlu1 %1450 }
 0x300   : > { %v3445_v49 = vpop.permute.xlu0 %1448  ;;  %v1471_v51 = vadd.f32 %v3443_v20, %v3326_v25 }
 0x301   : > { %v1470_v3 = vadd.f32 %v3445_v49, %v3329_v48  ;;  %v1908_v49 = vadd.f32 %v1516_v43, %v3538_v47 }
 0x303   : > { %v3447_v26 = vpop.permute.xlu1 %1454 }
 0x304   : > { %v3451_v11 = vpop.permute.xlu0 %1452  ;;  %v1473_v48 = vadd.f32 %v3447_v26, %v3338_v31 }
 0x307   : > { %v3462_v21 = vpop.permute.xlu1 %1458 }
 0x308   : > { %v3468_v54 = vpop.permute.xlu0 %1456  ;;  %v1475_v2 = vadd.f32 %v3462_v21, %v3350_v39 }
 0x30b   : > { %v1479_v19 = vpop.permute.xlu1 %1478 }
 0x30c   : > { %v1477_v53 = vpop.permute.xlu0 %1476  ;;  %v1501_v28 = vadd.f32 %v1479_v19, %v1469_v8  ;;  %v1519_v19 = vmul.f32 %v3530_v23, %v3530_v23  ;;  %v3619_v8 = vadd.f32 0.0001, %v1909_v50  ;;  %v1474_v50 = vadd.f32 %v3468_v54, %v3353_v4 }
 0x30d   : > { %v1500_v37 = vadd.f32 %v1477_v53, %v1468_v15  ;;  %v1518_v53 = vmul.f32 %v3541_v14, %v3541_v14  ;;  %v1523_v4 = vmul.f32 %v3552_v41, %v3552_v41 }
 0x30e   : > { %v1509_v25 = vmul.f32 0.11111111, %v1501_v28  ;;  %v1911_v9 = vadd.f32 %v1519_v19, %v3547_v29  ;;  %v1180_v28 = vmul.f32 0.11111111, %v3291_v13 }
 0x30f   : > { %v1483_v56 = vpop.permute.xlu1 %1482  ;;  %v1508_v60 = vmul.f32 0.11111111, %v1500_v37  ;;  %v1910_v33 = vadd.f32 %v1518_v53, %v3556_v45  ;;  %v1521_v37 = vmul.f32 %v3543_v36, %v3543_v36 }
 0x310   : > { %v1481_v0 = vpop.permute.xlu0 %1480  ;;  %v1503_v20 = vadd.f32 %v1483_v56, %v1471_v51  ;;  %v1472_v56 = vadd.f32 %v3451_v11, %v3341_v18  ;;  %v1525_v31 = vsub.f32 %v1509_v25, %v3567_v40  ;;  %v1197_v18 = vsub.f32 %v1181_v52, %v3534_v46 }
 0x311   : > { %v1502_v15 = vadd.f32 %v1481_v0, %v1470_v3  ;;  %v1524_v51 = vsub.f32 %v1508_v60, %v1516_v43  ;;  %v1183_v11 = vmul.f32 0.11111111, %v3295_v6  ;;  %v1196_v40 = vsub.f32 %v1180_v28, %v3538_v47 }
 0x312   : > { %v1511_v26 = vmul.f32 0.11111111, %v1503_v20  ;;  %v1916_v43 = vadd.f32 0.0001, %v1908_v49  ;;  %v1919_v6 = vadd.f32 0.0001, %v1911_v9 }
 0x313   : > { %v1487_v62 = vpop.permute.xlu1 %1486  ;;  %v1510_v13 = vmul.f32 0.11111111, %v1502_v15  ;;  %v1924_v52 = vadd.f32 %v1524_v51, %v1196_v40  ;;  %v1185_v47 = vmul.f32 0.11111111, %v3301_v35  ;;  %v1184_v49 = vmul.f32 0.11111111, %v3303_v5 }
 0x314   : > { %v1485_v34 = vpop.permute.xlu0 %1484  ;;  %v1505_v0 = vadd.f32 %v1487_v62, %v1473_v48  ;;  %v1182_v62 = vmul.f32 0.11111111, %v3297_v55  ;;  %v1527_v25 = vsub.f32 %v1511_v26, %v1519_v19  ;;  %v1918_v48 = vadd.f32 0.0001, %v1910_v33 }
 0x315   : > { %v1504_v3 = vadd.f32 %v1485_v34, %v1472_v56  ;;  %v1925_v34 = vadd.f32 %v1525_v31, %v1197_v18  ;;  %v1526_v20 = vsub.f32 %v1510_v13, %v1518_v53  ;;  %v1522_v19 = vmul.f32 %v3559_v57, %v3559_v57 }
 0x316   : > { %v1513_v46 = vmul.f32 0.11111111, %v1505_v0  ;;  %v1187_v53 = vmul.f32 0.11111111, %v3307_v38  ;;  %v1932_v35 = vadd.f32 0.0009, %v1924_v52  ;;  %v1913_v5 = vadd.f32 %v1521_v37, %v3563_v42 }
 0x317   : > { %v1491_v32 = vpop.permute.xlu1 %1490  ;;  %v1512_v60 = vmul.f32 0.11111111, %v1504_v3  ;;  %v1933_v56 = vadd.f32 0.0009, %v1925_v34  ;;  %v1200_v38 = vsub.f32 %v1184_v49, %v3572_v17  ;;  %v1915_v3 = vadd.f32 %v1523_v4, %v3576_v1 }
 0x318   : > { %v1489_v63 = vpop.permute.xlu0 %1488  ;;  %v1507_v39 = vadd.f32 %v1491_v32, %v1475_v2  ;;  %v1199_v32 = vsub.f32 %v1183_v11, %v3547_v29  ;;  %v1529_v31 = vsub.f32 %v1513_v46, %v1521_v37  ;;  %v1186_v29 = vmul.f32 0.11111111, %v3309_v10 }
 0x319   : > { %v1506_v54 = vadd.f32 %v1489_v63, %v1474_v50  ;;  %v1198_v63 = vsub.f32 %v1182_v62, %v3556_v45  ;;  %v1528_v26 = vsub.f32 %v1512_v60, %v1520_v22  ;;  %v1201_v45 = vsub.f32 %v1185_v47, %v3563_v42  ;;  %v3911_v42 = vld [vmem:[#allocation12_spill] sm:$0xff] }
 0x31a   : > { %v1515_v55 = vmul.f32 0.11111111, %v1507_v39  ;;  %v1927_v2 = vadd.f32 %v1527_v25, %v1199_v32  ;;  %v1912_v50 = vadd.f32 %v1520_v22, %v3572_v17  ;;  %v1845_v10 = vmul.f32 %v3520_v24, %v3466_v27  ;;  %v3913_v27 = vld [vmem:[#allocation47_spill] sm:$0xff] }
 0x31b   : > { %v1514_v9 = vmul.f32 0.11111111, %v1506_v54  ;;  %v1926_v33 = vadd.f32 %v1526_v20, %v1198_v63  ;;  %v1203_v11 = vsub.f32 %v1187_v53, %v3576_v1  ;;  %v1941_v39 = vmul.f32 %v1933_v56, %v3619_v8  ;;  %v3914_v1 = vld [vmem:[#allocation19_spill] sm:$0xff]  ;;  %v3915_v63 = vld [vmem:[#allocation38_spill] sm:$0xff] }
 0x31c   : > { %v1531_v51 = vsub.f32 %v1515_v55, %v1523_v4  ;;  %v1935_v40 = vadd.f32 0.0009, %v1927_v2  ;;  %v1929_v62 = vadd.f32 %v1529_v31, %v1201_v45  ;;  %v1202_v37 = vsub.f32 %v1186_v29, %v3911_v42  ;;  %v3912_v4 = vld [vmem:[#allocation46_spill] sm:$0xff]  ;;  %v3916_v53 = vld [vmem:[#allocation39_spill] sm:$0xff] }
 0x31d   : > { %v1530_v18 = vsub.f32 %v1514_v9, %v1522_v19  ;;  %v1940_v22 = vmul.f32 %v1932_v35, %v1916_v43  ;;  %v1934_v54 = vadd.f32 0.0009, %v1926_v33  ;;  %v1928_v34 = vadd.f32 %v1528_v26, %v1200_v38  ;;  %v3917_v35 = vld [vmem:[#allocation20_spill] sm:$0xff]  ;;  %v3918_v45 = vld [vmem:[#allocation11_spill] sm:$0xff]  ;;  %v3920_v38 = vld [vmem:[#allocation41_spill] sm:$0xff] }
 0x31e   : > { %v1931_v17 = vadd.f32 %v1531_v51, %v1203_v11  ;;  %v1844_v52 = vmul.f32 %v3526_v59, %v3912_v4  ;;  %v1847_v24 = vmul.f32 %v3530_v23, %v3913_v27  ;;  %v3685_v8 = vmul.f32 %v3541_v14, %v3914_v1 }
 0x31f   : > { %v1921_v20 = vadd.f32 0.0001, %v1913_v5  ;;  %v1920_v60 = vadd.f32 0.0001, %v1912_v50  ;;  %v1914_v43 = vadd.f32 %v1522_v19, %v3911_v42  ;;  %v1930_v32 = vadd.f32 %v1530_v18, %v1202_v37  ;;  %v3919_v5 = vld [vmem:[#allocation40_spill] sm:$0xff]  ;;  %v3921_v42 = vld [vmem:[#allocation22_spill] sm:$0xff] }
 0x320   : > { %2202 = vrcp.f32 %v1941_v39  ;;  %v1943_v47 = vmul.f32 %v1935_v40, %v1919_v6  ;;  %v1937_v55 = vadd.f32 0.0009, %v1929_v62  ;;  %v1942_v59 = vmul.f32 %v1934_v54, %v1918_v48 }
 0x321   : > { %2204 = vrcp.f32 %v1940_v22  ;;  %v1936_v9 = vadd.f32 0.0009, %v1928_v34  ;;  %v1923_v14 = vadd.f32 0.0001, %v1915_v3  ;;  %v1939_v2 = vadd.f32 0.0009, %v1931_v17 }
 0x322   : > { %v3694_v19 = vmul.f32 %v3543_v36, %v3917_v35  ;;  %v1922_v6 = vadd.f32 0.0001, %v1914_v43  ;;  %v1938_v33 = vadd.f32 0.0009, %v1930_v32  ;;  %2206 = vrcp.f32 %v1943_v47  ;;  %v3923_v17 = vld [vmem:[#allocation42_spill] sm:$0xff] }
 0x323   : > { %v1945_v48 = vmul.f32 %v1937_v55, %v1921_v20  ;;  %2208 = vrcp.f32 %v1942_v59  ;;  %v1944_v51 = vmul.f32 %v1936_v9, %v1920_v60  ;;  %v1947_v11 = vmul.f32 %v1939_v2, %v1923_v14 }
 0x324   : > { %v1946_v37 = vmul.f32 %v1938_v33, %v1922_v6 }
 0x325   : > { %2210 = vrcp.f32 %v1945_v48 }
 0x326   : > { %2212 = vrcp.f32 %v1944_v51 }
 0x327   : > { %2214 = vrcp.f32 %v1947_v11 }
 0x328   : > { %2216 = vrcp.f32 %v1946_v37 }
 0x32b   : > { %v3637_v44 = vpop.permute.xlu1 %1774 }
 0x32c   : > { %v3643_v21 = vpop.permute.xlu0 %1772  ;;  %v1797_v49 = vadd.f32 %v3637_v44, %v3915_v63  ;;  %v3698_v44 = vmul.f32 %v3550_v7, %v3918_v45  ;;  %v3706_v7 = vmul.f32 %v3552_v41, %v3921_v42 }
 0x32d   : > { %v1796_v23 = vadd.f32 %v3643_v21, %v3916_v53  ;;  %v2203_v53 = vpop.eup %2202 }
 0x32f   : > { %v3649_v15 = vpop.permute.xlu1 %1778 }
 0x330   : > { %v3653_v28 = vpop.permute.xlu0 %1776  ;;  %v1799_v21 = vadd.f32 %v3649_v15, %v3919_v5  ;;  %v3922_v15 = vld [vmem:[#allocation21_spill] sm:$0xff] }
 0x331   : > { %v1798_v3 = vadd.f32 %v3653_v28, %v3920_v38  ;;  %v3710_v34 = vmul.f32 %v3559_v57, %v3922_v15 }
 0x333   : > { %v3661_v0 = vpop.permute.xlu1 %1782 }
 0x334   : > { %v3666_v13 = vpop.permute.xlu0 %1780  ;;  %v1801_v28 = vadd.f32 %v3661_v0, %v3923_v17  ;;  %v3925_v0 = vld [vmem:[#allocation44_spill] sm:$0xff] }
 0x337   : > { %v3675_v25 = vpop.permute.xlu1 %1786 }
 0x338   : > { %v3677_v46 = vpop.permute.xlu0 %1784 }
 0x33b   : > { %v1807_v56 = vpop.permute.xlu1 %1806 }
 0x33c   : > { %v1829_v31 = vadd.f32 %v1807_v56, %v1797_v49  ;;  %v1805_v29 = vpop.permute.xlu0 %1804  ;;  %v1803_v49 = vadd.f32 %v3675_v25, %v3925_v0 }
 0x33d   : > { %v1828_v26 = vadd.f32 %v1805_v29, %v1796_v23  ;;  %v3926_v23 = vld [vmem:[#allocation45_spill] sm:$0xff]  ;;  %v2205_v29 = vpop.eup %2204 }
 0x33e   : > { %v1837_v50 = vmul.f32 0.11111111, %v1829_v31  ;;  %v1802_v56 = vadd.f32 %v3677_v46, %v3926_v23 }
 0x33f   : > { %v1836_v36 = vmul.f32 0.11111111, %v1828_v26  ;;  %v1811_v18 = vpop.permute.xlu1 %1810 }
 0x340   : > { %v1853_v39 = vsub.f32 %v1837_v50, %v1845_v10  ;;  %v1831_v40 = vadd.f32 %v1811_v18, %v1799_v21  ;;  %v1809_v62 = vpop.permute.xlu0 %1808  ;;  %v3924_v10 = vld [vmem:[#allocation43_spill] sm:$0xff]  ;;  %v2207_v50 = vpop.eup %2206 }
 0x341   : > { %v1852_v22 = vsub.f32 %v1836_v36, %v1844_v52  ;;  %v1830_v54 = vadd.f32 %v1809_v62, %v1798_v3  ;;  %v1800_v1 = vadd.f32 %v3666_v13, %v3924_v10  ;;  %v2209_v18 = vpop.eup %2208 }
 0x342   : > { %v1885_v4 = vmul.f32 2.0, %v1853_v39  ;;  %v1839_v27 = vmul.f32 0.11111111, %v1831_v40 }
 0x343   : > { %v1884_v20 = vmul.f32 2.0, %v1852_v22  ;;  %v1838_v41 = vmul.f32 0.11111111, %v1830_v54  ;;  %v1815_v60 = vpop.permute.xlu1 %1814  ;;  %v3927_v54 = vld [vmem:[#allocation23_spill] sm:$0xff] }
 0x344   : > { %v1893_v52 = vadd.f32 0.0009, %v1885_v4  ;;  %v1855_v43 = vsub.f32 %v1839_v27, %v1847_v24  ;;  %v1833_v32 = vadd.f32 %v1815_v60, %v1801_v28  ;;  %v1813_v47 = vpop.permute.xlu0 %1812  ;;  %v2211_v28 = vpop.eup %2210 }
 0x345   : > { %v1892_v57 = vadd.f32 0.0009, %v1884_v20  ;;  %v1854_v55 = vsub.f32 %v1838_v41, %v3685_v8  ;;  %v1832_v63 = vadd.f32 %v1813_v47, %v1800_v1  ;;  %v2213_v1 = vpop.eup %2212 }
 0x346   : > { %v1901_v59 = vmul.f32 %v1893_v52, %v3588_v58  ;;  %v1887_v9 = vmul.f32 2.0, %v1855_v43  ;;  %v1841_v13 = vmul.f32 0.11111111, %v1833_v32  ;;  %v2215_v52 = vpop.eup %2214 }
 0x347   : > { %v1900_v24 = vmul.f32 %v1892_v57, %v3592_v16  ;;  %v1886_v14 = vmul.f32 2.0, %v1854_v55  ;;  %v1840_v2 = vmul.f32 0.11111111, %v1832_v63  ;;  %v1819_v31 = vpop.permute.xlu1 %1818  ;;  %v2217_v57 = vpop.eup %2216  ;;  %v3928_v63 = vld [vmem:[#allocation13_spill] sm:$0xff] }
 0x348   : > { %v1957_v8 = vmul.f32 %v2203_v53, %v1901_v59  ;;  %v1895_v35 = vadd.f32 0.0009, %v1887_v9  ;;  %v1857_v6 = vsub.f32 %v1841_v13, %v3694_v19  ;;  %v1835_v25 = vadd.f32 %v1819_v31, %v1803_v49  ;;  %v1817_v33 = vpop.permute.xlu0 %1816  ;;  %v3929_v9 = vld [vmem:[#allocation24_spill] sm:$0xff] }
 0x349   : > { %v1956_v58 = vmul.f32 %v2205_v29, %v1900_v24  ;;  %v1894_v26 = vadd.f32 0.0009, %v1886_v14  ;;  %v1856_v45 = vsub.f32 %v1840_v2, %v3698_v44  ;;  %v1834_v48 = vadd.f32 %v1817_v33, %v1802_v56 }
 0x34a   : > { %v1965_v5 = vsub.f32 1.0, %v1957_v8  ;;  %v1903_v46 = vmul.f32 %v1895_v35, %v3597_v61  ;;  %v1889_v21 = vmul.f32 2.0, %v1857_v6  ;;  %v1843_v16 = vmul.f32 0.11111111, %v1835_v25 }
 0x34b   : > { %v1964_v51 = vsub.f32 1.0, %v1956_v58  ;;  %v1902_v38 = vmul.f32 %v1894_v26, %v3605_v30  ;;  %v1888_v3 = vmul.f32 2.0, %v1856_v45  ;;  %v1842_v36 = vmul.f32 0.11111111, %v1834_v48 }
 0x34c   : > { %v1973_v19 = vmul.f32 0.5, %v1965_v5  ;;  %v1959_v11 = vmul.f32 %v2207_v50, %v1903_v46  ;;  %v1897_v39 = vadd.f32 0.0009, %v1889_v21  ;;  %v1859_v40 = vsub.f32 %v1843_v16, %v3706_v7 }
 0x34d   : > { %v1972_v62 = vmul.f32 0.5, %v1964_v51  ;;  %v1958_v44 = vmul.f32 %v2209_v18, %v1902_v38  ;;  %v1896_v42 = vadd.f32 0.0009, %v1888_v3  ;;  %v1858_v37 = vsub.f32 %v1842_v36, %v3710_v34 }
 0x34e   : > { %v1981_v61 = vmax.f32 %v1973_v19, 0.0  ;;  %v1967_v22 = vsub.f32 1.0, %v1959_v11  ;;  %v1905_v15 = vmul.f32 %v1897_v39, %v3927_v54  ;;  %v1891_v17 = vmul.f32 2.0, %v1859_v40 }
 0x34f   : > { %v1980_v30 = vmax.f32 %v1972_v62, 0.0  ;;  %v1966_v4 = vsub.f32 1.0, %v1958_v44  ;;  %v1904_v27 = vmul.f32 %v1896_v42, %v3613_v12  ;;  %v1890_v10 = vmul.f32 2.0, %v1858_v37 }
 0x350   : > { %v1989_v20 = vmin.f32 %v1981_v61, 1.0  ;;  %v1975_v7 = vmul.f32 0.5, %v1967_v22  ;;  %v1961_v41 = vmul.f32 %v2211_v28, %v1905_v15  ;;  %v1899_v60 = vadd.f32 0.0009, %v1891_v17 }
 0x351   : > { %v1988_v43 = vmin.f32 %v1980_v30, 1.0  ;;  %v1974_v34 = vmul.f32 0.5, %v1966_v4  ;;  %v1960_v32 = vmul.f32 %v2213_v1, %v1904_v27  ;;  %v1898_v47 = vadd.f32 0.0009, %v1890_v10 }
 0x352   : > { %1998 = vst.msk [vmem:[%s3732_s28 + $0x8] sm:$0xff] %vm1996_vm5, %v1989_v20  ;;  %v1983_v12 = vmax.f32 %v1975_v7, 0.0  ;;  %v1969_v55 = vsub.f32 1.0, %v1961_v41  ;;  %v1907_v0 = vmul.f32 %v1899_v60, %v3928_v63 }
 0x353   : > { %1997 = vst.msk [vmem:[%s3732_s28] sm:$0xff] %vm1996_vm5, %v1988_v43  ;;  %v1982_v49 = vmax.f32 %v1974_v34, 0.0  ;;  %v1968_v59 = vsub.f32 1.0, %v1960_v32  ;;  %v1906_v13 = vmul.f32 %v1898_v47, %v3929_v9 }
 0x354   : > { %v1991_v53 = vmin.f32 %v1983_v12, 1.0  ;;  %v1977_v23 = vmul.f32 0.5, %v1969_v55  ;;  %v1963_v56 = vmul.f32 %v2215_v52, %v1907_v0 }
 0x355   : > { %v1990_v24 = vmin.f32 %v1982_v49, 1.0  ;;  %v1976_v14 = vmul.f32 0.5, %v1968_v59  ;;  %v1962_v2 = vmul.f32 %v2217_v57, %v1906_v13 }
 0x356   : > { %2000 = vst.msk [vmem:[%s3732_s28 + $0x18] sm:$0xff] %vm1996_vm5, %v1991_v53  ;;  %v1985_v31 = vmax.f32 %v1977_v23, 0.0  ;;  %v1971_v29 = vsub.f32 1.0, %v1963_v56 }
 0x357   : > { %1999 = vst.msk [vmem:[%s3732_s28 + $0x10] sm:$0xff] %vm1996_vm5, %v1990_v24  ;;  %v1984_v8 = vmax.f32 %v1976_v14, 0.0  ;;  %v1970_v35 = vsub.f32 1.0, %v1962_v2 }
 0x358   : > { %v1993_v6 = vmin.f32 %v1985_v31, 1.0  ;;  %v1979_v25 = vmul.f32 0.5, %v1971_v29 }
 0x359   : > { %v1992_v33 = vmin.f32 %v1984_v8, 1.0  ;;  %v1978_v58 = vmul.f32 0.5, %v1970_v35 }
 0x35a   : > { %2002 = vst.msk [vmem:[%s3732_s28 + $0x28] sm:$0xff] %vm1996_vm5, %v1993_v6  ;;  %v1987_v26 = vmax.f32 %v1979_v25, 0.0 }
 0x35b   : > { %2001 = vst.msk [vmem:[%s3732_s28 + $0x20] sm:$0xff] %vm1996_vm5, %v1992_v33  ;;  %v1986_v45 = vmax.f32 %v1978_v58, 0.0 }
 0x35c   : > { %v1995_v48 = vmin.f32 %v1987_v26, 1.0 }
 0x35d   : > { %v1994_v5 = vmin.f32 %v1986_v45, 1.0 }
 0x35e   : > { %2004 = vst.msk [vmem:[%s3732_s28 + $0x38] sm:$0xff] %vm1996_vm5, %v1995_v48 }
 0x35f   : > { %2003 = vst.msk [vmem:[%s3732_s28 + $0x30] sm:$0xff] %vm1996_vm5, %v1994_v5 }
 0x360   : > { %2303 = shalt.err (!%p2300_p4)
}
 0x361   : > { %s2304_s4 = scalar_lea.hbm %s3753_s23, 1024  ;;  %s2308_s5 = scalar_lea.hbm %s3804_s2, 2048 }
 0x362   : > { %p2305_p9 = scmp.ne.s32.totalorder %s3753_s23, %s2304_s4  ;;  %p2309_p5 = scmp.lt.s32.totalorder %s3753_s23, %s3804_s2 }
 0x363   : > { %p2310_p8 = scmp.lt.s32.totalorder %s2308_s5, %s2304_s4 }
 0x364   : > { %p2306_p11 = pnand %p2305_p9, %p3930_p1 }
 0x365   : > { %p2311_p6 = por %p2310_p8, %p2309_p5 }
 0x366   : > { %p2307_p3 = pneg %p2306_p11 }
 0x368   : > { %p2312_p13 = pnand %p2311_p6, %p2307_p3 }
 0x36a   : > { %2315 = shalt.err (!%p2312_p13)
}
 0x36b   : > { %s2369_s14 = smov 128   ;;  %s2370_s17 = smov 8  }
 0x36c   : > { %2147 = dma.vmem_to_hbm [thread:$0]  (%p3930_p1), %s3755_s24, 1024, %s3753_s23, %s2006_s13, %s2369_s14, %s2369_s14, %s2370_s17  }
 0x36d PF: > { %s2035_s28 = sand.u32 1, %s2346_s9   ;;  %p3931_p12 = scmp.ne.s32.totalorder %s3834_s22, 0 }
 0x36e   : > { %p3932_p7 = scmp.ge.s32.totalorder %s2358_s12, 2  ;;  %s2036_s19 = scalar_lea.sflag [#allocation4], %s2035_s28 }
 0x370   : > { %p2157_p10 = pnand %p3932_p7, %p3931_p12 }
 0x372   : > { %p2158_p0 = pneg %p2157_p10 }
 0x374   : > { %2341 = dma.done.wait (%p2158_p0), %s2036_s19, 1024  }
 0x375   : > { %2343 = vsyncadd (%p2158_p0), %s2036_s19, 4294966272  ;;  %p18_p2 = scmp.ge.s32.totalorder %s2411_s15, 4   ;;  %s3933_s9 = smov %s2350_s10 }
 0x376   : > { %s3934_s10 = smov %s2354_s11  ;;  %s3935_s11 = smov %s2423_s18 }
 0x377   : > { %s3936_s12 = smov %s2411_s15  ;;  %20 = sbr.rel (!%p18_p2) target bundleno = 7 (0x7), region = 86 }
 0x37c   :  { %2041 = vsyncpa [#allocation3], 1 }
 0x37d   :  { %2043 = vsyncpa [#allocation3 + $0x1], 1 }
 0x37e   :  { %2044 = vsyncpa [#allocation6], 1 }
 0x37f   :  { %2046 = vsyncpa [#allocation6 + $0x1], 1 }
 0x380   :  { %2047 = vsyncpa [#allocation4], 1 }
 0x381   :  { %2049 = vsyncpa [#allocation4 + $0x1], 1 }

</bundles_post_ra>
